<compile_context>
chip_gen: v7x
topology: tpu7x:2x2x1
jax: 0.10.0
libtpu: 0.0.40
codegen_flags: <defaults>
</compile_context>

<pallas_src>
import jax
import jax.numpy as jnp
from jax.experimental import pallas as pl
from jax.experimental.pallas import tpu as pltpu

_LANES = 128
_SUBLANES = 8
_BOXES_PER_ROW = _LANES // 4  # 32 boxes per 128-lane row


def _center_to_corner_jnp(x):
    """Pure-jnp reference / small-input & tail fallback (matches the module)."""
    cx, cy, w, h = jnp.split(x, 4, axis=-1)
    half_w = w / 2.0
    half_h = h / 2.0
    return jnp.concatenate(
        [cx - half_w, cy - half_h, cx + half_w, cy + half_h], axis=-1
    )


def _center_to_corner_lane_kernel(x_ref, o_ref):
    # x_ref / o_ref: (bm, 128) lane-dense tiles.  Each group of 4 consecutive
    # lanes holds one box: (cx, cy, w, h).
    x = x_ref[...]
    # Lane i+2 -> lane i: puts (w, h) on the (cx, cy) lanes.  (-2 roll written
    # as the non-negative equivalent shift 128 - 2.)
    wh_on_cxcy = pltpu.roll(x, shift=_LANES - 2, axis=1)
    # Lane i-2 -> lane i: puts (cx, cy) on the (w, h) lanes.
    cxcy_on_wh = pltpu.roll(x, shift=2, axis=1)
    # (1, 128) lane-id row; jnp.where broadcasts it over the bm sublanes, so we
    # pay one iota + one compare per grid step instead of bm/8 of each.
    lane = jax.lax.broadcasted_iota(jnp.int32, (1, _LANES), 1)
    is_center_lane = (lane & 3) < 2  # lanes 4k, 4k+1 carry (cx, cy)
    # lanes 4k, 4k+1:   cx - w/2, cy - h/2   -> (xmin, ymin)
    # lanes 4k+2, 4k+3: cx + w/2, cy + h/2   -> (xmax, ymax)
    # The wrap-around lanes of each roll are never selected by the mask, so the
    # per-row rotation is safe.
    o_ref[...] = jnp.where(
        is_center_lane,
        x - 0.5 * wh_on_cxcy,
        cxcy_on_wh + 0.5 * x,
    )


def _corners_from_lane_view(lanes, block_rows):
    """Run the lane-dense kernel over a (rows, 128) view."""
    rows = lanes.shape[0]

    bm = min(block_rows, rows)
    if bm < rows:
        # Partial blocks require the sublane dim to be a multiple of 8.
        bm = max(_SUBLANES, (bm // _SUBLANES) * _SUBLANES)
    elif rows >= 2 * _SUBLANES:
        # A 1-step grid forfeits the second TensorCore on v7x; split in two so
        # dimension_semantics=("parallel",) has something to shard.
        half = -(-rows // 2)                        # ceil(rows / 2)
        half = -(-half // _SUBLANES) * _SUBLANES    # round up to multiple of 8
        if half < rows:
            bm = half

    grid = (pl.cdiv(rows, bm),)  # last block may be partial; OOB rows dropped

    return pl.pallas_call(
        _center_to_corner_lane_kernel,
        out_shape=jax.ShapeDtypeStruct((rows, _LANES), lanes.dtype),
        grid=grid,
        in_specs=[pl.BlockSpec((bm, _LANES), lambda i: (i, 0))],
        out_specs=pl.BlockSpec((bm, _LANES), lambda i: (i, 0)),
        compiler_params=pltpu.CompilerParams(
            dimension_semantics=("parallel",),   # megacore sharding on v7x
            vmem_limit_bytes=32 << 20,           # 16 MiB working set fits on v5e/v6e/v7x
        ),
    )(lanes)


def bbox_center_to_corner(x, *, block_rows=8192, min_pallas_boxes=32768):
    """x: (..., 4) array of (cx, cy, w, h) boxes -> (..., 4) corner boxes."""
    assert x.shape[-1] == 4, "last axis must hold (cx, cy, w, h)"
    orig_shape = x.shape

    n_boxes = 1
    for d in orig_shape[:-1]:
        n_boxes *= int(d)

    # Tiny inputs: pallas_call launch + reshape chain dwarfs the work.
    if n_boxes < max(min_pallas_boxes, _BOXES_PER_ROW):
        return _center_to_corner_jnp(x)

    flat = x.reshape(-1)  # contiguous (cx, cy, w, h, cx, cy, ...) stream

    # Kernel handles the 32-box-aligned prefix; a <=31-box tail (if any) goes
    # through the jnp path, so no full-array pad / slice copies are paid.
    n_main = (n_boxes // _BOXES_PER_ROW) * _BOXES_PER_ROW
    rows = n_main // _BOXES_PER_ROW

    main_lanes = flat[: n_main * 4].reshape(rows, _LANES)
    out_main = _corners_from_lane_view(main_lanes, block_rows).reshape(-1)

    if n_main == n_boxes:
        out_flat = out_main
    else:
        tail = flat[n_main * 4 :].reshape(-1, 4)
        out_tail = _center_to_corner_jnp(tail).reshape(-1)
        out_flat = jnp.concatenate([out_main, out_tail])

    return out_flat.reshape(orig_shape)


if __name__ == "__main__":
    key = jax.random.PRNGKey(0)
    k1, k2, k3 = jax.random.split(key, 3)

    # 1) Small shape matching the module's (..., 4) contract: jnp fallback path.
    x_small = jax.random.uniform(k1, (2, 8, 4), dtype=jnp.float32) * 32.0
    y_small = jax.block_until_ready(bbox_center_to_corner(x_small))
    assert y_small.shape == x_small.shape and y_small.dtype == x_small.dtype
    assert jnp.allclose(y_small, _center_to_corner_jnp(x_small), atol=1e-6)

    # 2) 32768 boxes (512 KiB): default-threshold Pallas path, 2-step grid.
    x_big = jax.random.uniform(k2, (4, 8192, 4), dtype=jnp.float32) * 32.0
    y_big = jax.block_until_ready(bbox_center_to_corner(x_big))
    assert y_big.shape == x_big.shape and y_big.dtype == x_big.dtype
    assert jnp.allclose(y_big, _center_to_corner_jnp(x_big), atol=1e-6)

    # 3) Box count not a multiple of 32: aligned prefix via the kernel, tail
    #    via jnp (forced onto the kernel path to exercise it at a small size).
    x_odd = jax.random.uniform(k3, (3, 1001, 4), dtype=jnp.float32) * 32.0
    y_odd = jax.block_until_ready(
        bbox_center_to_corner(x_odd, min_pallas_boxes=0)
    )
    assert y_odd.shape == x_odd.shape and y_odd.dtype == x_odd.dtype
    assert jnp.allclose(y_odd, _center_to_corner_jnp(x_odd), atol=1e-6)

    print("KERNEL_OK")
</pallas_src>

<mosaic_0001>
module attributes {stable_mosaic.version = 11 : i64} {
  func.func @_center_to_corner_lane_kernel(%arg0: i32, %arg1: memref<512x128xf32, #tpu.memory_space<vmem>>, %arg2: memref<512x128xf32, #tpu.memory_space<vmem>>) attributes {dimension_semantics = [#tpu.dimension_semantics<parallel>], iteration_bounds = array<i64: 2>, scalar_prefetch = 0 : i64, scratch_operands = 0 : i64, tpu.core_type = #tpu.core_type<tc>, window_params = [{transform_indices = @transform_0, window_bounds = array<i64: 512, 128>}, {transform_indices = @transform_1, window_bounds = array<i64: 512, 128>}]} {
    %c0 = arith.constant 0 : index
    %c0_0 = arith.constant 0 : index
    %0 = vector.load %arg1[%c0, %c0_0] : memref<512x128xf32, #tpu.memory_space<vmem>>, vector<512x128xf32>
    %c126_i32 = arith.constant 126 : i32
    %1 = tpu.dynamic_rotate %0 by %c126_i32 dim 1 : vector<512x128xf32>, i32 -> vector<512x128xf32>
    %c2_i32 = arith.constant 2 : i32
    %2 = tpu.dynamic_rotate %0 by %c2_i32 dim 1 : vector<512x128xf32>, i32 -> vector<512x128xf32>
    %3 = tpu.iota {dimensions = array<i32: 1>} : vector<1x128xi32>
    %c3_i32 = arith.constant 3 : i32
    %4 = vector.broadcast %c3_i32 : i32 to vector<1x128xi32>
    %5 = arith.andi %3, %4 : vector<1x128xi32>
    %c2_i32_1 = arith.constant 2 : i32
    %6 = vector.broadcast %c2_i32_1 : i32 to vector<1x128xi32>
    %7 = arith.cmpi slt, %5, %6 : vector<1x128xi32>
    %cst = arith.constant 5.000000e-01 : f32
    %8 = vector.broadcast %cst : f32 to vector<512x128xf32>
    %9 = arith.mulf %8, %1 : vector<512x128xf32>
    %10 = arith.subf %0, %9 : vector<512x128xf32>
    %cst_2 = arith.constant 5.000000e-01 : f32
    %11 = vector.broadcast %cst_2 : f32 to vector<512x128xf32>
    %12 = arith.mulf %11, %0 : vector<512x128xf32>
    %13 = arith.addf %2, %12 : vector<512x128xf32>
    %14 = vector.shape_cast %7 : vector<1x128xi1> to vector<1x128xi1>
    %15 = vector.broadcast %14 : vector<1x128xi1> to vector<512x128xi1>
    %16 = arith.select %15, %10, %13 : vector<512x128xi1>, vector<512x128xf32>
    %c0_3 = arith.constant 0 : index
    %c0_4 = arith.constant 0 : index
    %17 = vector.load %arg2[%c0_3, %c0_4] : memref<512x128xf32, #tpu.memory_space<vmem>>, vector<512x128xf32>
    tpu.vector_store %arg2[%c0_3, %c0_4], %16 {strides = array<i32>} : memref<512x128xf32, #tpu.memory_space<vmem>>, vector<512x128xf32>,
    return
  }
  func.func @transform_0(%arg0: i32) -> (i32, i32) {
    %c0_i32 = arith.constant 0 : i32
    %c0_i32_0 = arith.constant 0 : i32
    return %arg0, %c0_i32 : i32, i32
  }
  func.func @transform_1(%arg0: i32) -> (i32, i32) {
    %c0_i32 = arith.constant 0 : i32
    %c0_i32_0 = arith.constant 0 : i32
    return %arg0, %c0_i32 : i32, i32
  }
}

</mosaic_0001>

<bundles_post_ra>
// kernel: tpu_custom_call.1
= control target key start
LH: loop header
LB: loop body
LE: loop exit
PB: predicated region body
PF: predicated region fallthrough
CT: control target
= control target key end

     0   :  { %6 = vsyncpa [#allocation3], 0  ;;  %s2255_s0 = inlined_call_operand.hbm [shape: f32[1024,128], index: 0, kind: input, shape index: {}]   ;;  %s2256_s1 = inlined_call_operand.hbm [shape: f32[1024,128], index: 1, kind: output, shape index: {}]  }
   0x1   :  { %8 = vsyncpa [#allocation3 + $0x1], 0 }
   0x2   :  { %9 = vsyncpa [#allocation4], 0 }
   0x3   :  { %11 = vsyncpa [#allocation4 + $0x1], 0  ;;  %s1132_s6 = smov 0   ;;  %s1134_s7 = smov 0  }
   0x4   :  { %s1136_s8 = smov 0   ;;  %s1138_s9 = smov 0  }
   0x5 LB: > { %s1153_s10 = sadd.s32 4294967295, %s1112_s9   ;;  %s934_s11 = sadd.s32 4294967294, %s1112_s9   ;;  %s1112_s9 = sphi %s1138_s9, %s2447_s9   ;;  %s1108_s8 = sphi %s1136_s8, %s2446_s8   ;;  %s1104_s7 = sphi %s1134_s7, %s2445_s7   ;;  %s1100_s6 = sphi %s1132_s6, %s2444_s6  }
   0x6   : > { %s1157_s12 = sadd.s32 1, %s1112_s9   ;;  %s24_s13 = sadd.s32 1, %s1108_s8 }
   0x7   : > { %s21_s14 = ssub.s32 %s1112_s9, %s1157_s12  ;;  %p31_p0 = scmp.ne.s32.totalorder %s1108_s8, %s1104_s7 }
   0x8   : > { %p22_p1 = scmp.eq.s32.totalorder %s21_s14, 0  ;;  %p32_p2 = scmp.eq.s32.totalorder %s1112_s9, 0 }
   0x9   : > { %p37_p3 = scmp.ne.s32.totalorder %s1104_s7, %s1100_s6  ;;  %p38_p4 = scmp.eq.s32.totalorder %s1153_s10, 0 }
   0xa   : > { %s1169_s15 = scalar_select %p22_p1, %s1108_s8, %s24_s13  }
   0xb   : > { %p1171_p5 = por %p32_p2, %p31_p0  ;;  %p1175_p6 = por %p38_p4, %p37_p3 }
   0xc   : > { %p61_p7 = scmp.eq.s32.totalorder %s1153_s10, 1  ;;  %p67_p8 = scmp.eq.s32.totalorder %s934_s11, 1 }
   0xd   : > { %p962_p10 = scmp.lt.s32.totalorder %s1112_s9, 2  ;;  %s87_s20 = sand.u32 1, %s1108_s8  }
   0xe   : > { %p1182_p11 = por %p61_p7, %p31_p0  ;;  %p1186_p12 = por %p67_p8, %p37_p3 }
   0xf   : > { %s948_s21 = sshll.u32 %s1112_s9, 13  ;;  %s937_s22 = sshll.u32 %s87_s20, 9 }
  0x10   : > { %s2282_s18 = scalar_select %p1182_p11, 1, 0 }
  0x11   : > { %s2283_s19 = scalar_select %p1186_p12, 1, 0 }
  0x12   : > { %s1195_s25 = scalar_lea.hbm %s2255_s0, %s948_s21  ;;  %s91_s26 = scalar_lea.vmem [#allocation2], %s937_s22 }
  0x13   : > { %s98_s27 = sshll.u32 %s91_s26, 4  ;;  %p1199_p13 = pnand %p962_p10, %p1171_p5  ;;  %s1203_s27 = int_to_ptr.vmem [resolvable:$true] %s98_s27 }
  0x14   : > { %s1205_s29 = scalar_lea.sflag [#allocation3], %s87_s20  ;;  %s1016_s30 = scalar_lea.hbm %s1195_s25, 8192 }
  0x15   : > { %p1017_p0 = scmp.ne.s32.totalorder %s1195_s25, %s1016_s30  ;;  %p1018_p1 = pneg %p1199_p13 }
  0x16   : > { %s1021_s4 = scalar_lea.hbm %s2255_s0, 16384  ;;  %p1022_p4 = scmp.lt.u32.totalorder %s1195_s25, %s2255_s0 }
  0x17   : > { %p1019_p2 = pnand %p1018_p1, %p1017_p0  ;;  %p1023_p5 = scmp.lt.u32.totalorder %s1021_s4, %s1016_s30 }
  0x18   : > { %p1025_p8 = scmp.lt.u32.totalorder %s1016_s30, %s1195_s25 }
  0x19   : > { %p1020_p3 = pneg %p1019_p2  ;;  %p1024_p7 = por %p1023_p5, %p1022_p4 }
  0x1b   : > { %p1026_p10 = por %p1025_p8, %p1024_p7 }
  0x1d   : > { %p1027_p9 = pnand %p1026_p10, %p1020_p3 }
  0x1f   : > { %1030 = shalt.err (!%p1027_p9)
}
  0x20   : > { %s1031_s13 = scalar_lea.vmem %s1203_s27, 8192  ;;  %s1114_s14 = smov [#allocation2]  }
  0x21   : > { %p1032_p0 = scmp.ne.s32.totalorder %s1203_s27, %s1031_s13  ;;  %s1036_s16 = sshll.u32 %s1114_s14, 4  ;;  %s1037_s16 = int_to_ptr.vmem [resolvable:$false] %s1036_s16 }
  0x22   : > { %s1038_s20 = scalar_lea.vmem %s1037_s16, 16384  ;;  %p1039_p11 = scmp.lt.s32.totalorder %s1203_s27, %s1037_s16 }
  0x23   : > { %p1034_p2 = pnand %p1032_p0, %p1018_p1  ;;  %p1040_p4 = scmp.lt.s32.totalorder %s1038_s20, %s1031_s13 }
  0x25   : > { %p1035_p12 = pneg %p1034_p2  ;;  %p1041_p5 = por %p1040_p4, %p1039_p11 }
  0x27   : > { %p1042_p7 = pnand %p1041_p5, %p1035_p12 }
  0x29   : > { %1045 = shalt.err (!%p1042_p7)
}
  0x2a   : > { %s1115_s21 = smov 128   ;;  %s1116_s22 = smov 8  }
  0x2b   : > { %957 = dma.hbm_to_vmem [thread:$0]  (!%p1199_p13), %s1195_s25, 8192, %s1203_s27, %s1205_s29, %s1115_s21, %s1115_s21, %s1116_s22  }
  0x2c   : > { %p940_p9 = scmp.ge.s32.totalorder %s1112_s9, 1  ;;  %p106_p1 = scmp.lt.s32.totalorder %s1112_s9, 3 }
  0x2e   : > { %p107_p3 = pnand %p940_p9, %p106_p1 }
  0x30   : > { %110 = sbr.rel (%p107_p3) target bundleno = 445 (0x1bd), region = 24 }
  0x37   : > { %s1236_s23 = sand.u32 1, %s1104_s7  }
  0x38   : > { %s941_s24 = sshll.u32 %s1236_s23, 9  ;;  %s113_s26 = scalar_lea.sflag [#allocation3], %s1236_s23 }
  0x39   : > { %s1242_s30 = scalar_lea.vmem [#allocation2], %s941_s24 }
  0x3a   : > { %1091 = dma.done.wait (%p1175_p6), %s113_s26, 8192  }
  0x3b   : > { %1093 = vsyncadd (%p1175_p6), %s113_s26, 4294959104  ;;  %v1249_v0 = vld [vmem:[%s1242_s30 + $0x10] sm:$0xff]  ;;  %v1252_v1 = vld [vmem:[%s1242_s30] sm:$0xff]  ;;  %s1117_s25 = smov 126   ;;  %s1118_s17 = smov 2  }
  0x3c   : > { %205 = vrot.lane.b32.xlu1 %v1249_v0, %s1117_s25  ;;  %201 = vrot.lane.b32.xlu0 %v1252_v1, %s1117_s25  ;;  %v1259_v2 = vld [vmem:[%s1242_s30 + $0x18] sm:$0xff]  ;;  %v1262_v3 = vld [vmem:[%s1242_s30 + $0x8] sm:$0xff]  ;;  %s1840_s27 = scalar_lea.vmem [#allocation5], %s941_s24  ;;  %s949_s28 = sshll.u32 %s1153_s10, 13 }
  0x3d   : > { %v1269_v4 = vld [vmem:[%s1242_s30 + $0x28] sm:$0xff]  ;;  %v1272_v5 = vld [vmem:[%s1242_s30 + $0x20] sm:$0xff]  ;;  %v1279_v6 = vld [vmem:[%s1242_s30 + $0x38] sm:$0xff]  ;;  %s861_s29 = sshll.u32 %s1840_s27, 4  ;;  %s2203_s3 = scalar_lea.hbm %s2256_s1, %s949_s28  ;;  %s2205_s29 = int_to_ptr.vmem [resolvable:$true] %s861_s29 }
  0x3e   : > { %v1282_v7 = vld [vmem:[%s1242_s30 + $0x30] sm:$0xff]  ;;  %v1289_v8 = vld [vmem:[%s1242_s30 + $0x48] sm:$0xff]  ;;  %v1292_v9 = vld [vmem:[%s1242_s30 + $0x40] sm:$0xff]  ;;  %s848_s4 = scalar_lea.sflag [#allocation4], %s1236_s23  ;;  %s1046_s5 = scalar_lea.vmem %s2205_s29, 8192 }
  0x3f   : > { %v1299_v10 = vld [vmem:[%s1242_s30 + $0x58] sm:$0xff]  ;;  %v1302_v11 = vld [vmem:[%s1242_s30 + $0x50] sm:$0xff]  ;;  %v1309_v12 = vld [vmem:[%s1242_s30 + $0x68] sm:$0xff]  ;;  %p1047_p6 = scmp.ne.s32.totalorder %s2205_s29, %s1046_s5  ;;  %p2441_p11 = scmp.ne.s32.totalorder %s2282_s18, 0 }
  0x40   : > { %207 = vrot.lane.b32.xlu1 %v1259_v2, %s1117_s25  ;;  %203 = vrot.lane.b32.xlu0 %v1262_v3, %s1117_s25  ;;  %v1312_v13 = vld [vmem:[%s1242_s30 + $0x60] sm:$0xff]  ;;  %v1319_v14 = vld [vmem:[%s1242_s30 + $0x78] sm:$0xff]  ;;  %s1119_s11 = smov [#allocation5]  }
  0x41   : > { %v1322_v15 = vld [vmem:[%s1242_s30 + $0x70] sm:$0xff]  ;;  %v1329_v16 = vld [vmem:[%s1242_s30 + $0x88] sm:$0xff]  ;;  %v1332_v17 = vld [vmem:[%s1242_s30 + $0x80] sm:$0xff]  ;;  %p1048_p12 = pnand %p1047_p6, %p2441_p11  ;;  %s1050_s13 = sshll.u32 %s1119_s11, 4  ;;  %s1051_s13 = int_to_ptr.vmem [resolvable:$false] %s1050_s13 }
  0x42   : > { %v1339_v18 = vld [vmem:[%s1242_s30 + $0x98] sm:$0xff]  ;;  %v1342_v19 = vld [vmem:[%s1242_s30 + $0x90] sm:$0xff]  ;;  %v1349_v20 = vld [vmem:[%s1242_s30 + $0xa8] sm:$0xff]  ;;  %s1052_s14 = scalar_lea.vmem %s1051_s13, 16384  ;;  %p1053_p8 = scmp.lt.s32.totalorder %s2205_s29, %s1051_s13 }
  0x43   : > { %v1352_v21 = vld [vmem:[%s1242_s30 + $0xa0] sm:$0xff]  ;;  %v1359_v22 = vld [vmem:[%s1242_s30 + $0xb8] sm:$0xff]  ;;  %v1362_v23 = vld [vmem:[%s1242_s30 + $0xb0] sm:$0xff]  ;;  %p1049_p13 = pneg %p1048_p12  ;;  %p1054_p10 = scmp.lt.s32.totalorder %s1052_s14, %s1046_s5 }
  0x44   : > { %211 = vrot.lane.b32.xlu1 %v1269_v4, %s1117_s25  ;;  %209 = vrot.lane.b32.xlu0 %v1272_v5, %s1117_s25  ;;  %v1369_v24 = vld [vmem:[%s1242_s30 + $0xc8] sm:$0xff]  ;;  %v1372_v25 = vld [vmem:[%s1242_s30 + $0xc0] sm:$0xff] }
  0x45   : > { %v1379_v26 = vld [vmem:[%s1242_s30 + $0xd8] sm:$0xff]  ;;  %v1382_v27 = vld [vmem:[%s1242_s30 + $0xd0] sm:$0xff]  ;;  %v1389_v28 = vld [vmem:[%s1242_s30 + $0xe8] sm:$0xff]  ;;  %p1055_p0 = por %p1054_p10, %p1053_p8 }
  0x46   : > { %v1392_v29 = vld [vmem:[%s1242_s30 + $0xe0] sm:$0xff]  ;;  %v1399_v30 = vld [vmem:[%s1242_s30 + $0xf8] sm:$0xff]  ;;  %v1402_v31 = vld [vmem:[%s1242_s30 + $0xf0] sm:$0xff] }
  0x47   : > { %v1409_v32 = vld [vmem:[%s1242_s30 + $0x108] sm:$0xff]  ;;  %v1412_v33 = vld [vmem:[%s1242_s30 + $0x100] sm:$0xff]  ;;  %v1419_v34 = vld [vmem:[%s1242_s30 + $0x118] sm:$0xff]  ;;  %p1056_p2 = pnand %p1055_p0, %p1049_p13 }
  0x48   : > { %215 = vrot.lane.b32.xlu1 %v1279_v6, %s1117_s25  ;;  %213 = vrot.lane.b32.xlu0 %v1282_v7, %s1117_s25  ;;  %v1422_v35 = vld [vmem:[%s1242_s30 + $0x110] sm:$0xff]  ;;  %v1429_v36 = vld [vmem:[%s1242_s30 + $0x128] sm:$0xff] }
  0x49   : > { %v1432_v37 = vld [vmem:[%s1242_s30 + $0x120] sm:$0xff]  ;;  %v1439_v38 = vld [vmem:[%s1242_s30 + $0x138] sm:$0xff]  ;;  %v1442_v39 = vld [vmem:[%s1242_s30 + $0x130] sm:$0xff] }
  0x4a   : > { %v1449_v40 = vld [vmem:[%s1242_s30 + $0x148] sm:$0xff]  ;;  %v1452_v41 = vld [vmem:[%s1242_s30 + $0x140] sm:$0xff]  ;;  %v1459_v42 = vld [vmem:[%s1242_s30 + $0x158] sm:$0xff] }
  0x4b   : > { %v1462_v43 = vld [vmem:[%s1242_s30 + $0x150] sm:$0xff]  ;;  %v1469_v44 = vld [vmem:[%s1242_s30 + $0x168] sm:$0xff]  ;;  %v1472_v45 = vld [vmem:[%s1242_s30 + $0x160] sm:$0xff] }
  0x4c   : > { %219 = vrot.lane.b32.xlu1 %v1289_v8, %s1117_s25  ;;  %217 = vrot.lane.b32.xlu0 %v1292_v9, %s1117_s25  ;;  %2285 = vst [vmem:[#allocation8_spill] sm:$0xff] %v1469_v44  ;;  %2286 = vst [vmem:[#allocation9_spill] sm:$0xff] %v1472_v45  ;;  %v1479_v46 = vld [vmem:[%s1242_s30 + $0x178] sm:$0xff]  ;;  %v1482_v47 = vld [vmem:[%s1242_s30 + $0x170] sm:$0xff] }
  0x4d   : > { %2287 = vst [vmem:[#allocation10_spill] sm:$0xff] %v1479_v46  ;;  %2288 = vst [vmem:[#allocation11_spill] sm:$0xff] %v1482_v47  ;;  %v1489_v48 = vld [vmem:[%s1242_s30 + $0x188] sm:$0xff]  ;;  %v1492_v49 = vld [vmem:[%s1242_s30 + $0x180] sm:$0xff] }
  0x4e   : > { %2289 = vst [vmem:[#allocation12_spill] sm:$0xff] %v1489_v48  ;;  %2290 = vst [vmem:[#allocation13_spill] sm:$0xff] %v1492_v49  ;;  %v1499_v50 = vld [vmem:[%s1242_s30 + $0x198] sm:$0xff]  ;;  %v1502_v51 = vld [vmem:[%s1242_s30 + $0x190] sm:$0xff] }
  0x4f   : > { %2291 = vst [vmem:[#allocation14_spill] sm:$0xff] %v1499_v50  ;;  %2292 = vst [vmem:[#allocation15_spill] sm:$0xff] %v1502_v51  ;;  %v1509_v52 = vld [vmem:[%s1242_s30 + $0x1a8] sm:$0xff]  ;;  %v1512_v53 = vld [vmem:[%s1242_s30 + $0x1a0] sm:$0xff] }
  0x50   : > { %223 = vrot.lane.b32.xlu1 %v1299_v10, %s1117_s25  ;;  %221 = vrot.lane.b32.xlu0 %v1302_v11, %s1117_s25  ;;  %v1519_v54 = vld [vmem:[%s1242_s30 + $0x1b8] sm:$0xff]  ;;  %v1522_v55 = vld [vmem:[%s1242_s30 + $0x1b0] sm:$0xff] }
  0x51   : > { %v1529_v56 = vld [vmem:[%s1242_s30 + $0x1c8] sm:$0xff]  ;;  %v1532_v57 = vld [vmem:[%s1242_s30 + $0x1c0] sm:$0xff]  ;;  %v1539_v58 = vld [vmem:[%s1242_s30 + $0x1d8] sm:$0xff] }
  0x52   : > { %2293 = vst [vmem:[#allocation16_spill] sm:$0xff] %v1529_v56  ;;  %2294 = vst [vmem:[#allocation17_spill] sm:$0xff] %v1532_v57  ;;  %v1542_v59 = vld [vmem:[%s1242_s30 + $0x1d0] sm:$0xff]  ;;  %v1553_v62 = vld [vmem:[%s1242_s30 + $0x1e8] sm:$0xff] }
  0x53   : > { %2295 = vst [vmem:[#allocation18_spill] sm:$0xff] %v1539_v58  ;;  %2296 = vst [vmem:[#allocation19_spill] sm:$0xff] %v1542_v59  ;;  %v1556_v63 = vld [vmem:[%s1242_s30 + $0x1e0] sm:$0xff] }
  0x54   : > { %227 = vrot.lane.b32.xlu1 %v1309_v12, %s1117_s25  ;;  %225 = vrot.lane.b32.xlu0 %v1312_v13, %s1117_s25  ;;  %2299 = vst [vmem:[#allocation22_spill] sm:$0xff] %v1553_v62  ;;  %2300 = vst [vmem:[#allocation23_spill] sm:$0xff] %v1556_v63 }
  0x58   : > { %231 = vrot.lane.b32.xlu1 %v1319_v14, %s1117_s25  ;;  %229 = vrot.lane.b32.xlu0 %v1322_v15, %s1117_s25 }
  0x5c   : > { %235 = vrot.lane.b32.xlu1 %v1329_v16, %s1117_s25  ;;  %233 = vrot.lane.b32.xlu0 %v1332_v17, %s1117_s25 }
  0x60   : > { %239 = vrot.lane.b32.xlu1 %v1339_v18, %s1117_s25  ;;  %237 = vrot.lane.b32.xlu0 %v1342_v19, %s1117_s25 }
  0x64   : > { %243 = vrot.lane.b32.xlu1 %v1349_v20, %s1117_s25  ;;  %241 = vrot.lane.b32.xlu0 %v1352_v21, %s1117_s25 }
  0x68   : > { %247 = vrot.lane.b32.xlu1 %v1359_v22, %s1117_s25  ;;  %245 = vrot.lane.b32.xlu0 %v1362_v23, %s1117_s25 }
  0x6c   : > { %251 = vrot.lane.b32.xlu1 %v1369_v24, %s1117_s25  ;;  %249 = vrot.lane.b32.xlu0 %v1372_v25, %s1117_s25 }
  0x70   : > { %255 = vrot.lane.b32.xlu1 %v1379_v26, %s1117_s25  ;;  %253 = vrot.lane.b32.xlu0 %v1382_v27, %s1117_s25 }
  0x74   : > { %259 = vrot.lane.b32.xlu1 %v1389_v28, %s1117_s25  ;;  %257 = vrot.lane.b32.xlu0 %v1392_v29, %s1117_s25 }
  0x78   : > { %263 = vrot.lane.b32.xlu1 %v1399_v30, %s1117_s25  ;;  %261 = vrot.lane.b32.xlu0 %v1402_v31, %s1117_s25 }
  0x7c   : > { %267 = vrot.lane.b32.xlu1 %v1409_v32, %s1117_s25  ;;  %265 = vrot.lane.b32.xlu0 %v1412_v33, %s1117_s25 }
  0x80   : > { %271 = vrot.lane.b32.xlu1 %v1419_v34, %s1117_s25  ;;  %269 = vrot.lane.b32.xlu0 %v1422_v35, %s1117_s25 }
  0x84   : > { %275 = vrot.lane.b32.xlu1 %v1429_v36, %s1117_s25  ;;  %273 = vrot.lane.b32.xlu0 %v1432_v37, %s1117_s25 }
  0x88   : > { %279 = vrot.lane.b32.xlu1 %v1439_v38, %s1117_s25  ;;  %277 = vrot.lane.b32.xlu0 %v1442_v39, %s1117_s25 }
  0x8c   : > { %283 = vrot.lane.b32.xlu1 %v1449_v40, %s1117_s25  ;;  %281 = vrot.lane.b32.xlu0 %v1452_v41, %s1117_s25 }
  0x90   : > { %287 = vrot.lane.b32.xlu1 %v1459_v42, %s1117_s25  ;;  %285 = vrot.lane.b32.xlu0 %v1462_v43, %s1117_s25 }
  0x94   : > { %291 = vrot.lane.b32.xlu1 %v1469_v44, %s1117_s25  ;;  %289 = vrot.lane.b32.xlu0 %v1472_v45, %s1117_s25 }
  0x98   : > { %295 = vrot.lane.b32.xlu1 %v1479_v46, %s1117_s25  ;;  %293 = vrot.lane.b32.xlu0 %v1482_v47, %s1117_s25 }
  0x9c   : > { %299 = vrot.lane.b32.xlu1 %v1489_v48, %s1117_s25  ;;  %297 = vrot.lane.b32.xlu0 %v1492_v49, %s1117_s25 }
  0xa0   : > { %303 = vrot.lane.b32.xlu1 %v1499_v50, %s1117_s25  ;;  %301 = vrot.lane.b32.xlu0 %v1502_v51, %s1117_s25 }
  0xa4   : > { %307 = vrot.lane.b32.xlu1 %v1509_v52, %s1117_s25  ;;  %305 = vrot.lane.b32.xlu0 %v1512_v53, %s1117_s25 }
  0xa8   : > { %311 = vrot.lane.b32.xlu1 %v1519_v54, %s1117_s25  ;;  %309 = vrot.lane.b32.xlu0 %v1522_v55, %s1117_s25 }
  0xac   : > { %315 = vrot.lane.b32.xlu1 %v1529_v56, %s1117_s25  ;;  %313 = vrot.lane.b32.xlu0 %v1532_v57, %s1117_s25 }
  0xae   : > { %v1544_v60 = vpop.permute.xlu1 %205  ;;  %v1546_v61 = vpop.permute.xlu0 %201 }
  0xaf   : > { %2297 = vst [vmem:[#allocation20_spill] sm:$0xff] %v1544_v60  ;;  %2298 = vst [vmem:[#allocation21_spill] sm:$0xff] %v1546_v61  ;;  %v1567_v60 = vld [vmem:[%s1242_s30 + $0x1f8] sm:$0xff] }
  0xb0   : > { %319 = vrot.lane.b32.xlu1 %v1539_v58, %s1117_s25  ;;  %317 = vrot.lane.b32.xlu0 %v1542_v59, %s1117_s25  ;;  %2302 = vst [vmem:[#allocation25_spill] sm:$0xff] %v1567_v60  ;;  %v1570_v58 = vld [vmem:[%s1242_s30 + $0x1f0] sm:$0xff] }
  0xb1   : > { %2303 = vst [vmem:[#allocation26_spill] sm:$0xff] %v1570_v58 }
  0xb2   : > { %v1558_v56 = vpop.permute.xlu1 %207  ;;  %v1560_v57 = vpop.permute.xlu0 %203 }
  0xb3   : > { %2301 = vst [vmem:[#allocation24_spill] sm:$0xff] %v1558_v56 }
  0xb4   : > { %323 = vrot.lane.b32.xlu1 %v1553_v62, %s1117_s25  ;;  %321 = vrot.lane.b32.xlu0 %v1556_v63, %s1117_s25 }
  0xb6   : > { %v1572_v61 = vpop.permute.xlu1 %211  ;;  %v1574_v59 = vpop.permute.xlu0 %209 }
  0xb7   : > { %2304 = vst [vmem:[#allocation27_spill] sm:$0xff] %v1574_v59 }
  0xb8   : > { %327 = vrot.lane.b32.xlu1 %v1567_v60, %s1117_s25  ;;  %325 = vrot.lane.b32.xlu0 %v1570_v58, %s1117_s25 }
  0xba   : > { %v1580_v56 = vpop.permute.xlu1 %215  ;;  %v1582_v62 = vpop.permute.xlu0 %213 }
  0xbb   : > { %2305 = vst [vmem:[#allocation28_spill] sm:$0xff] %v1582_v62 }
  0xbc   : > { %331 = vrot.lane.b32.xlu1 %v1262_v3, %s1118_s17  ;;  %329 = vrot.lane.b32.xlu0 %v1252_v1, %s1118_s17 }
  0xbe   : > { %v1588_v63 = vpop.permute.xlu1 %219  ;;  %v1590_v59 = vpop.permute.xlu0 %217 }
  0xbf   : > { %2306 = vst [vmem:[#allocation29_spill] sm:$0xff] %v1588_v63  ;;  %2307 = vst [vmem:[#allocation30_spill] sm:$0xff] %v1590_v59 }
  0xc0   : > { %335 = vrot.lane.b32.xlu1 %v1259_v2, %s1118_s17  ;;  %333 = vrot.lane.b32.xlu0 %v1249_v0, %s1118_s17 }
  0xc2   : > { %v1596_v58 = vpop.permute.xlu1 %223  ;;  %v1598_v60 = vpop.permute.xlu0 %221 }
  0xc3   : > { %2308 = vst [vmem:[#allocation31_spill] sm:$0xff] %v1596_v58  ;;  %2309 = vst [vmem:[#allocation32_spill] sm:$0xff] %v1598_v60 }
  0xc4   : > { %339 = vrot.lane.b32.xlu1 %v1269_v4, %s1118_s17  ;;  %337 = vrot.lane.b32.xlu0 %v1272_v5, %s1118_s17 }
  0xc6   : > { %v1604_v62 = vpop.permute.xlu1 %227  ;;  %v1606_v63 = vpop.permute.xlu0 %225 }
  0xc7   : > { %2310 = vst [vmem:[#allocation33_spill] sm:$0xff] %v1604_v62  ;;  %2311 = vst [vmem:[#allocation34_spill] sm:$0xff] %v1606_v63 }
  0xc8   : > { %343 = vrot.lane.b32.xlu1 %v1279_v6, %s1118_s17  ;;  %341 = vrot.lane.b32.xlu0 %v1282_v7, %s1118_s17 }
  0xca   : > { %v1612_v59 = vpop.permute.xlu1 %231  ;;  %v1614_v58 = vpop.permute.xlu0 %229 }
  0xcb   : > { %2312 = vst [vmem:[#allocation35_spill] sm:$0xff] %v1612_v59  ;;  %2313 = vst [vmem:[#allocation36_spill] sm:$0xff] %v1614_v58 }
  0xcc   : > { %347 = vrot.lane.b32.xlu1 %v1289_v8, %s1118_s17  ;;  %345 = vrot.lane.b32.xlu0 %v1292_v9, %s1118_s17 }
  0xce   : > { %v1620_v60 = vpop.permute.xlu1 %235  ;;  %v1622_v62 = vpop.permute.xlu0 %233 }
  0xcf   : > { %2314 = vst [vmem:[#allocation37_spill] sm:$0xff] %v1620_v60  ;;  %2315 = vst [vmem:[#allocation38_spill] sm:$0xff] %v1622_v62 }
  0xd0   : > { %351 = vrot.lane.b32.xlu1 %v1299_v10, %s1118_s17  ;;  %349 = vrot.lane.b32.xlu0 %v1302_v11, %s1118_s17 }
  0xd2   : > { %v1628_v63 = vpop.permute.xlu1 %239  ;;  %v1630_v59 = vpop.permute.xlu0 %237 }
  0xd3   : > { %2316 = vst [vmem:[#allocation39_spill] sm:$0xff] %v1628_v63  ;;  %2317 = vst [vmem:[#allocation40_spill] sm:$0xff] %v1630_v59 }
  0xd4   : > { %355 = vrot.lane.b32.xlu1 %v1309_v12, %s1118_s17  ;;  %353 = vrot.lane.b32.xlu0 %v1312_v13, %s1118_s17 }
  0xd6   : > { %v1636_v58 = vpop.permute.xlu1 %243  ;;  %v1638_v60 = vpop.permute.xlu0 %241 }
  0xd7   : > { %2318 = vst [vmem:[#allocation41_spill] sm:$0xff] %v1636_v58  ;;  %2319 = vst [vmem:[#allocation42_spill] sm:$0xff] %v1638_v60 }
  0xd8   : > { %359 = vrot.lane.b32.xlu1 %v1319_v14, %s1118_s17  ;;  %357 = vrot.lane.b32.xlu0 %v1322_v15, %s1118_s17 }
  0xda   : > { %v1644_v62 = vpop.permute.xlu1 %247  ;;  %v1646_v63 = vpop.permute.xlu0 %245 }
  0xdb   : > { %2320 = vst [vmem:[#allocation43_spill] sm:$0xff] %v1644_v62  ;;  %2321 = vst [vmem:[#allocation44_spill] sm:$0xff] %v1646_v63 }
  0xdc   : > { %363 = vrot.lane.b32.xlu1 %v1329_v16, %s1118_s17  ;;  %361 = vrot.lane.b32.xlu0 %v1332_v17, %s1118_s17 }
  0xde   : > { %v1652_v59 = vpop.permute.xlu1 %251  ;;  %v1654_v58 = vpop.permute.xlu0 %249 }
  0xdf   : > { %2322 = vst [vmem:[#allocation45_spill] sm:$0xff] %v1652_v59  ;;  %2323 = vst [vmem:[#allocation46_spill] sm:$0xff] %v1654_v58 }
  0xe0   : > { %367 = vrot.lane.b32.xlu1 %v1339_v18, %s1118_s17  ;;  %365 = vrot.lane.b32.xlu0 %v1342_v19, %s1118_s17 }
  0xe2   : > { %v1660_v60 = vpop.permute.xlu1 %255  ;;  %v1662_v62 = vpop.permute.xlu0 %253 }
  0xe3   : > { %2324 = vst [vmem:[#allocation47_spill] sm:$0xff] %v1660_v60  ;;  %2325 = vst [vmem:[#allocation48_spill] sm:$0xff] %v1662_v62 }
  0xe4   : > { %371 = vrot.lane.b32.xlu1 %v1349_v20, %s1118_s17  ;;  %369 = vrot.lane.b32.xlu0 %v1352_v21, %s1118_s17 }
  0xe6   : > { %v1668_v63 = vpop.permute.xlu1 %259  ;;  %v1670_v59 = vpop.permute.xlu0 %257 }
  0xe7   : > { %2326 = vst [vmem:[#allocation49_spill] sm:$0xff] %v1668_v63  ;;  %2327 = vst [vmem:[#allocation50_spill] sm:$0xff] %v1670_v59 }
  0xe8   : > { %375 = vrot.lane.b32.xlu1 %v1359_v22, %s1118_s17  ;;  %373 = vrot.lane.b32.xlu0 %v1362_v23, %s1118_s17 }
  0xea   : > { %v1676_v58 = vpop.permute.xlu1 %263  ;;  %v1678_v60 = vpop.permute.xlu0 %261 }
  0xeb   : > { %2328 = vst [vmem:[#allocation51_spill] sm:$0xff] %v1676_v58  ;;  %2329 = vst [vmem:[#allocation52_spill] sm:$0xff] %v1678_v60 }
  0xec   : > { %379 = vrot.lane.b32.xlu1 %v1369_v24, %s1118_s17  ;;  %377 = vrot.lane.b32.xlu0 %v1372_v25, %s1118_s17 }
  0xee   : > { %v1684_v62 = vpop.permute.xlu1 %267  ;;  %v1686_v63 = vpop.permute.xlu0 %265 }
  0xef   : > { %2330 = vst [vmem:[#allocation53_spill] sm:$0xff] %v1684_v62  ;;  %2331 = vst [vmem:[#allocation54_spill] sm:$0xff] %v1686_v63 }
  0xf0   : > { %383 = vrot.lane.b32.xlu1 %v1379_v26, %s1118_s17  ;;  %381 = vrot.lane.b32.xlu0 %v1382_v27, %s1118_s17 }
  0xf2   : > { %v1692_v59 = vpop.permute.xlu1 %271  ;;  %v1694_v58 = vpop.permute.xlu0 %269 }
  0xf3   : > { %2332 = vst [vmem:[#allocation55_spill] sm:$0xff] %v1692_v59  ;;  %2333 = vst [vmem:[#allocation56_spill] sm:$0xff] %v1694_v58 }
  0xf4   : > { %387 = vrot.lane.b32.xlu1 %v1389_v28, %s1118_s17  ;;  %385 = vrot.lane.b32.xlu0 %v1392_v29, %s1118_s17 }
  0xf6   : > { %v1700_v60 = vpop.permute.xlu1 %275  ;;  %v1702_v62 = vpop.permute.xlu0 %273 }
  0xf7   : > { %2334 = vst [vmem:[#allocation57_spill] sm:$0xff] %v1700_v60  ;;  %2335 = vst [vmem:[#allocation58_spill] sm:$0xff] %v1702_v62 }
  0xf8   : > { %391 = vrot.lane.b32.xlu1 %v1399_v30, %s1118_s17  ;;  %389 = vrot.lane.b32.xlu0 %v1402_v31, %s1118_s17 }
  0xfa   : > { %v1708_v63 = vpop.permute.xlu1 %279  ;;  %v1710_v59 = vpop.permute.xlu0 %277 }
  0xfb   : > { %2336 = vst [vmem:[#allocation59_spill] sm:$0xff] %v1708_v63  ;;  %2337 = vst [vmem:[#allocation60_spill] sm:$0xff] %v1710_v59 }
  0xfc   : > { %395 = vrot.lane.b32.xlu1 %v1409_v32, %s1118_s17  ;;  %393 = vrot.lane.b32.xlu0 %v1412_v33, %s1118_s17 }
  0xfe   : > { %v1716_v58 = vpop.permute.xlu1 %283  ;;  %v1718_v60 = vpop.permute.xlu0 %281 }
  0xff   : > { %2338 = vst [vmem:[#allocation61_spill] sm:$0xff] %v1716_v58  ;;  %2339 = vst [vmem:[#allocation62_spill] sm:$0xff] %v1718_v60 }
 0x100   : > { %399 = vrot.lane.b32.xlu1 %v1419_v34, %s1118_s17  ;;  %397 = vrot.lane.b32.xlu0 %v1422_v35, %s1118_s17 }
 0x102   : > { %v1724_v62 = vpop.permute.xlu1 %287  ;;  %v1726_v63 = vpop.permute.xlu0 %285 }
 0x103   : > { %2340 = vst [vmem:[#allocation63_spill] sm:$0xff] %v1724_v62  ;;  %2341 = vst [vmem:[#allocation64_spill] sm:$0xff] %v1726_v63 }
 0x104   : > { %403 = vrot.lane.b32.xlu1 %v1429_v36, %s1118_s17  ;;  %401 = vrot.lane.b32.xlu0 %v1432_v37, %s1118_s17 }
 0x106   : > { %v1732_v59 = vpop.permute.xlu1 %291  ;;  %v1734_v58 = vpop.permute.xlu0 %289 }
 0x107   : > { %2342 = vst [vmem:[#allocation65_spill] sm:$0xff] %v1732_v59  ;;  %2343 = vst [vmem:[#allocation66_spill] sm:$0xff] %v1734_v58 }
 0x108   : > { %407 = vrot.lane.b32.xlu1 %v1439_v38, %s1118_s17  ;;  %405 = vrot.lane.b32.xlu0 %v1442_v39, %s1118_s17 }
 0x10a   : > { %v1740_v60 = vpop.permute.xlu1 %295  ;;  %v1742_v62 = vpop.permute.xlu0 %293 }
 0x10b   : > { %2344 = vst [vmem:[#allocation67_spill] sm:$0xff] %v1740_v60  ;;  %2345 = vst [vmem:[#allocation68_spill] sm:$0xff] %v1742_v62 }
 0x10c   : > { %411 = vrot.lane.b32.xlu1 %v1449_v40, %s1118_s17  ;;  %409 = vrot.lane.b32.xlu0 %v1452_v41, %s1118_s17 }
 0x10e   : > { %v1748_v63 = vpop.permute.xlu1 %299  ;;  %v1750_v59 = vpop.permute.xlu0 %297 }
 0x10f   : > { %2346 = vst [vmem:[#allocation69_spill] sm:$0xff] %v1748_v63  ;;  %2347 = vst [vmem:[#allocation70_spill] sm:$0xff] %v1750_v59 }
 0x110   : > { %415 = vrot.lane.b32.xlu1 %v1459_v42, %s1118_s17  ;;  %413 = vrot.lane.b32.xlu0 %v1462_v43, %s1118_s17 }
 0x112   : > { %v1756_v58 = vpop.permute.xlu1 %303  ;;  %v1758_v60 = vpop.permute.xlu0 %301 }
 0x113   : > { %2348 = vst [vmem:[#allocation71_spill] sm:$0xff] %v1756_v58  ;;  %2349 = vst [vmem:[#allocation72_spill] sm:$0xff] %v1758_v60 }
 0x114   : > { %419 = vrot.lane.b32.xlu1 %v1469_v44, %s1118_s17  ;;  %417 = vrot.lane.b32.xlu0 %v1472_v45, %s1118_s17 }
 0x116   : > { %v1764_v62 = vpop.permute.xlu1 %307  ;;  %v1766_v63 = vpop.permute.xlu0 %305 }
 0x117   : > { %2350 = vst [vmem:[#allocation73_spill] sm:$0xff] %v1764_v62  ;;  %2351 = vst [vmem:[#allocation74_spill] sm:$0xff] %v1766_v63 }
 0x118   : > { %423 = vrot.lane.b32.xlu1 %v1479_v46, %s1118_s17  ;;  %421 = vrot.lane.b32.xlu0 %v1482_v47, %s1118_s17  ;;  %v592_v46 = vmul.f32 0.5, %v1259_v2 }
 0x11a   : > { %v1772_v59 = vpop.permute.xlu1 %311  ;;  %v1774_v58 = vpop.permute.xlu0 %309 }
 0x11b   : > { %2352 = vst [vmem:[#allocation75_spill] sm:$0xff] %v1772_v59  ;;  %2353 = vst [vmem:[#allocation76_spill] sm:$0xff] %v1774_v58  ;;  %v457_v58 = vlaneseq }
 0x11c   : > { %427 = vrot.lane.b32.xlu1 %v1489_v48, %s1118_s17  ;;  %425 = vrot.lane.b32.xlu0 %v1492_v49, %s1118_s17 }
 0x11d   : > { %v458_v49 = vand.u32 127, %v457_v58  ;;  %v2363_v58 = vld [vmem:[#allocation16_spill] sm:$0xff] }
 0x11e   : > { %v1780_v60 = vpop.permute.xlu1 %315  ;;  %v1782_v62 = vpop.permute.xlu0 %313 }
 0x11f   : > { %2354 = vst [vmem:[#allocation77_spill] sm:$0xff] %v1780_v60  ;;  %2355 = vst [vmem:[#allocation78_spill] sm:$0xff] %v1782_v62 }
 0x120   : > { %431 = vrot.lane.b32.xlu1 %v1499_v50, %s1118_s17  ;;  %429 = vrot.lane.b32.xlu0 %v1502_v51, %s1118_s17 }
 0x122   : > { %v1788_v63 = vpop.permute.xlu1 %319  ;;  %v1790_v59 = vpop.permute.xlu0 %317 }
 0x123   : > { %2356 = vst [vmem:[#allocation79_spill] sm:$0xff] %v1788_v63  ;;  %2357 = vst [vmem:[#allocation80_spill] sm:$0xff] %v1790_v59  ;;  %v2360_v63 = vld [vmem:[#allocation21_spill] sm:$0xff] }
 0x124   : > { %435 = vrot.lane.b32.xlu1 %v1509_v52, %s1118_s17  ;;  %433 = vrot.lane.b32.xlu0 %v1512_v53, %s1118_s17  ;;  %v461_v59 = vmul.f32 0.5, %v2360_v63  ;;  %v459_v52 = vand.u32 3, %v458_v49  ;;  %v462_v53 = vmul.f32 0.5, %v1560_v57 }
 0x126   : > { %v1796_v60 = vpop.permute.xlu1 %323  ;;  %v1798_v62 = vpop.permute.xlu0 %321  ;;  %v525_v63 = vsub.f32 %v1252_v1, %v461_v59  ;;  %vm1819_vm0 = vcmp.lt.s32.totalorder %v459_v52, 2 }
 0x127   : > { %2358 = vst [vmem:[#allocation81_spill] sm:$0xff] %v1796_v60  ;;  %2359 = vst [vmem:[#allocation82_spill] sm:$0xff] %v1798_v62  ;;  %v590_v60 = vmul.f32 0.5, %v1262_v3  ;;  %v589_v62 = vmul.f32 0.5, %v1252_v1  ;;  %v2370_v1 = vld [vmem:[#allocation19_spill] sm:$0xff] }
 0x128   : > { %439 = vrot.lane.b32.xlu1 %v1519_v54, %s1118_s17  ;;  %437 = vrot.lane.b32.xlu0 %v1522_v55, %s1118_s17  ;;  %v2364_v54 = vld [vmem:[#allocation17_spill] sm:$0xff]  ;;  %v2365_v55 = vld [vmem:[#allocation20_spill] sm:$0xff] }
 0x129   : > { %v463_v48 = vmul.f32 0.5, %v2365_v55  ;;  %v2369_v55 = vld [vmem:[#allocation18_spill] sm:$0xff] }
 0x12a   : > { %v1805_v51 = vpop.permute.xlu1 %327  ;;  %v1807_v50 = vpop.permute.xlu0 %325 }
 0x12b   : > { %2361 = vst [vmem:[#allocation21_spill] sm:$0xff] %v1805_v51  ;;  %2362 = vst [vmem:[#allocation83_spill] sm:$0xff] %v1807_v50  ;;  %v2366_v51 = vld [vmem:[#allocation24_spill] sm:$0xff]  ;;  %v527_v52 = vsub.f32 %v1249_v0, %v463_v48  ;;  %v2373_v48 = vld [vmem:[#allocation23_spill] sm:$0xff] }
 0x12c   : > { %443 = vrot.lane.b32.xlu1 %v2363_v58, %s1118_s17  ;;  %441 = vrot.lane.b32.xlu0 %v2364_v54, %s1118_s17  ;;  %v464_v47 = vmul.f32 0.5, %v2366_v51  ;;  %v526_v58 = vsub.f32 %v1262_v3, %v462_v53  ;;  %v591_v54 = vmul.f32 0.5, %v1249_v0  ;;  %v594_v0 = vmul.f32 0.5, %v1269_v4 }
 0x12e   : > { %v332_v57 = vpop.permute.xlu1 %331  ;;  %v330_v50 = vpop.permute.xlu0 %329  ;;  %v528_v3 = vsub.f32 %v1259_v2, %v464_v47  ;;  %v593_v2 = vmul.f32 0.5, %v1272_v5  ;;  %v2372_v47 = vld [vmem:[#allocation22_spill] sm:$0xff] }
 0x12f   : > { %v654_v45 = vadd.f32 %v590_v60, %v332_v57  ;;  %v653_v44 = vadd.f32 %v589_v62, %v330_v50  ;;  %v466_v50 = vmul.f32 0.5, %v1572_v61  ;;  %v2371_v60 = vld [vmem:[#allocation27_spill] sm:$0xff] }
 0x130   : > { %447 = vrot.lane.b32.xlu1 %v2369_v55, %s1118_s17  ;;  %445 = vrot.lane.b32.xlu0 %v2370_v1, %s1118_s17  ;;  %v465_v62 = vmul.f32 0.5, %v2371_v60  ;;  %v2374_v55 = vld [vmem:[#allocation28_spill] sm:$0xff] }
 0x131   : > { %v720_v51 = vsel %vm1819_vm0, %v526_v58, %v654_v45  ;;  %v719_v59 = vsel %vm1819_vm0, %v525_v63, %v653_v44  ;;  %v530_v58 = vsub.f32 %v1269_v4, %v466_v50  ;;  %v467_v1 = vmul.f32 0.5, %v2374_v55  ;;  %v2375_v4 = vld [vmem:[#allocation25_spill] sm:$0xff] }
 0x132   : > { %784 = vst [vmem:[%s1840_s27 + $0x8] sm:$0xff] %v720_v51  ;;  %783 = vst [vmem:[%s1840_s27] sm:$0xff] %v719_v59  ;;  %v336_v45 = vpop.permute.xlu1 %335  ;;  %v334_v53 = vpop.permute.xlu0 %333 }
 0x133   : > { %v656_v44 = vadd.f32 %v592_v46, %v336_v45  ;;  %v655_v63 = vadd.f32 %v591_v54, %v334_v53  ;;  %v529_v46 = vsub.f32 %v1272_v5, %v465_v62  ;;  %v468_v54 = vmul.f32 0.5, %v1580_v56  ;;  %v2376_v5 = vld [vmem:[#allocation26_spill] sm:$0xff] }
 0x134   : > { %451 = vrot.lane.b32.xlu1 %v2372_v47, %s1118_s17  ;;  %449 = vrot.lane.b32.xlu0 %v2373_v48, %s1118_s17  ;;  %v531_v53 = vsub.f32 %v1282_v7, %v467_v1  ;;  %v2379_v1 = vld [vmem:[#allocation31_spill] sm:$0xff] }
 0x135   : > { %v722_v61 = vsel %vm1819_vm0, %v528_v3, %v656_v44  ;;  %v721_v57 = vsel %vm1819_vm0, %v527_v52, %v655_v63  ;;  %v596_v3 = vmul.f32 0.5, %v1279_v6  ;;  %v595_v52 = vmul.f32 0.5, %v1282_v7  ;;  %v2377_v44 = vld [vmem:[#allocation29_spill] sm:$0xff] }
 0x136   : > { %786 = vst [vmem:[%s1840_s27 + $0x18] sm:$0xff] %v722_v61  ;;  %785 = vst [vmem:[%s1840_s27 + $0x10] sm:$0xff] %v721_v57  ;;  %v340_v51 = vpop.permute.xlu1 %339  ;;  %v338_v59 = vpop.permute.xlu0 %337  ;;  %v532_v62 = vsub.f32 %v1279_v6, %v468_v54  ;;  %v470_v63 = vmul.f32 0.5, %v2377_v44 }
 0x137   : > { %v658_v60 = vadd.f32 %v594_v0, %v340_v51  ;;  %v657_v45 = vadd.f32 %v593_v2, %v338_v59  ;;  %v2378_v0 = vld [vmem:[#allocation30_spill] sm:$0xff]  ;;  %v472_v51 = vmul.f32 0.5, %v2379_v1  ;;  %v2380_v59 = vld [vmem:[#allocation32_spill] sm:$0xff] }
 0x138   : > { %455 = vrot.lane.b32.xlu1 %v2375_v4, %s1118_s17  ;;  %453 = vrot.lane.b32.xlu0 %v2376_v5, %s1118_s17  ;;  %v469_v2 = vmul.f32 0.5, %v2378_v0  ;;  %v534_v54 = vsub.f32 %v1289_v8, %v470_v63  ;;  %v600_v5 = vmul.f32 0.5, %v1299_v10  ;;  %v2382_v63 = vld [vmem:[#allocation34_spill] sm:$0xff] }
 0x139   : > { %v724_v56 = vsel %vm1819_vm0, %v530_v58, %v658_v60  ;;  %v723_v50 = vsel %vm1819_vm0, %v529_v46, %v657_v45  ;;  %v598_v58 = vmul.f32 0.5, %v1289_v8  ;;  %v597_v46 = vmul.f32 0.5, %v1292_v9 }
 0x13a   : > { %788 = vst [vmem:[%s1840_s27 + $0x28] sm:$0xff] %v724_v56  ;;  %787 = vst [vmem:[%s1840_s27 + $0x20] sm:$0xff] %v723_v50  ;;  %v344_v47 = vpop.permute.xlu1 %343  ;;  %v342_v48 = vpop.permute.xlu0 %341  ;;  %v533_v55 = vsub.f32 %v1292_v9, %v469_v2  ;;  %v471_v60 = vmul.f32 0.5, %v2380_v59  ;;  %v599_v56 = vmul.f32 0.5, %v1302_v11  ;;  %v536_v50 = vsub.f32 %v1299_v10, %v472_v51 }
 0x13b   : > { %v660_v61 = vadd.f32 %v596_v3, %v344_v47  ;;  %v659_v57 = vadd.f32 %v595_v52, %v342_v48  ;;  %v473_v0 = vmul.f32 0.5, %v2382_v63 }
 0x13d   : > { %v726_v6 = vsel %vm1819_vm0, %v532_v62, %v660_v61  ;;  %v725_v7 = vsel %vm1819_vm0, %v531_v53, %v659_v57  ;;  %v535_v62 = vsub.f32 %v1302_v11, %v471_v60  ;;  %v2381_v53 = vld [vmem:[#allocation33_spill] sm:$0xff]  ;;  %v602_v57 = vmul.f32 0.5, %v1309_v12 }
 0x13e   : > { %790 = vst [vmem:[%s1840_s27 + $0x38] sm:$0xff] %v726_v6  ;;  %789 = vst [vmem:[%s1840_s27 + $0x30] sm:$0xff] %v725_v7  ;;  %v348_v45 = vpop.permute.xlu1 %347  ;;  %v346_v3 = vpop.permute.xlu0 %345  ;;  %v474_v44 = vmul.f32 0.5, %v2381_v53  ;;  %v537_v6 = vsub.f32 %v1312_v13, %v473_v0  ;;  %v2383_v7 = vld [vmem:[#allocation35_spill] sm:$0xff]  ;;  %v606_v0 = vmul.f32 0.5, %v1329_v16 }
 0x13f   : > { %v662_v52 = vadd.f32 %v598_v58, %v348_v45  ;;  %v661_v4 = vadd.f32 %v597_v46, %v346_v3  ;;  %v601_v58 = vmul.f32 0.5, %v1312_v13  ;;  %v604_v3 = vmul.f32 0.5, %v1319_v14 }
 0x140   : > { %v538_v46 = vsub.f32 %v1309_v12, %v474_v44 }
 0x141   : > { %v728_v8 = vsel %vm1819_vm0, %v534_v54, %v662_v52  ;;  %v727_v9 = vsel %vm1819_vm0, %v533_v55, %v661_v4  ;;  %v476_v54 = vmul.f32 0.5, %v2383_v7  ;;  %v2384_v55 = vld [vmem:[#allocation36_spill] sm:$0xff]  ;;  %v603_v52 = vmul.f32 0.5, %v1322_v15 }
 0x142   : > { %792 = vst [vmem:[%s1840_s27 + $0x48] sm:$0xff] %v728_v8  ;;  %791 = vst [vmem:[%s1840_s27 + $0x40] sm:$0xff] %v727_v9  ;;  %v352_v2 = vpop.permute.xlu1 %351  ;;  %v350_v47 = vpop.permute.xlu0 %349  ;;  %v475_v1 = vmul.f32 0.5, %v2384_v55  ;;  %v2386_v9 = vld [vmem:[#allocation38_spill] sm:$0xff]  ;;  %v607_v55 = vmul.f32 0.5, %v1342_v19 }
 0x143   : > { %v664_v48 = vadd.f32 %v600_v5, %v352_v2  ;;  %v663_v61 = vadd.f32 %v599_v56, %v350_v47  ;;  %v540_v4 = vsub.f32 %v1319_v14, %v476_v54  ;;  %v2385_v56 = vld [vmem:[#allocation37_spill] sm:$0xff]  ;;  %v605_v2 = vmul.f32 0.5, %v1332_v17 }
 0x144   : > { %v539_v5 = vsub.f32 %v1322_v15, %v475_v1  ;;  %v478_v8 = vmul.f32 0.5, %v2385_v56  ;;  %v608_v54 = vmul.f32 0.5, %v1339_v18  ;;  %v609_v56 = vmul.f32 0.5, %v1352_v21 }
 0x145   : > { %v730_v10 = vsel %vm1819_vm0, %v536_v50, %v664_v48  ;;  %v729_v11 = vsel %vm1819_vm0, %v535_v62, %v663_v61  ;;  %v477_v50 = vmul.f32 0.5, %v2386_v9  ;;  %v2387_v61 = vld [vmem:[#allocation39_spill] sm:$0xff] }
 0x146   : > { %794 = vst [vmem:[%s1840_s27 + $0x58] sm:$0xff] %v730_v10  ;;  %793 = vst [vmem:[%s1840_s27 + $0x50] sm:$0xff] %v729_v11  ;;  %v356_v51 = vpop.permute.xlu1 %355  ;;  %v354_v59 = vpop.permute.xlu0 %353  ;;  %v542_v47 = vsub.f32 %v1329_v16, %v478_v8 }
 0x147   : > { %v666_v60 = vadd.f32 %v602_v57, %v356_v51  ;;  %v665_v45 = vadd.f32 %v601_v58, %v354_v59  ;;  %v541_v48 = vsub.f32 %v1332_v17, %v477_v50  ;;  %v480_v57 = vmul.f32 0.5, %v2387_v61  ;;  %v2388_v58 = vld [vmem:[#allocation40_spill] sm:$0xff]  ;;  %v2389_v59 = vld [vmem:[#allocation41_spill] sm:$0xff]  ;;  %v2391_v50 = vld [vmem:[#allocation43_spill] sm:$0xff] }
 0x148   : > { %v479_v10 = vmul.f32 0.5, %v2388_v58 }
 0x149   : > { %v732_v12 = vsel %vm1819_vm0, %v538_v46, %v666_v60  ;;  %v731_v13 = vsel %vm1819_vm0, %v537_v6, %v665_v45  ;;  %v544_v1 = vsub.f32 %v1339_v18, %v480_v57  ;;  %v482_v60 = vmul.f32 0.5, %v2389_v59  ;;  %v2390_v45 = vld [vmem:[#allocation42_spill] sm:$0xff]  ;;  %v2393_v57 = vld [vmem:[#allocation45_spill] sm:$0xff] }
 0x14a   : > { %796 = vst [vmem:[%s1840_s27 + $0x68] sm:$0xff] %v732_v12  ;;  %795 = vst [vmem:[%s1840_s27 + $0x60] sm:$0xff] %v731_v13  ;;  %v360_v62 = vpop.permute.xlu1 %359  ;;  %v358_v53 = vpop.permute.xlu0 %357  ;;  %v543_v51 = vsub.f32 %v1342_v19, %v479_v10  ;;  %v486_v58 = vmul.f32 0.5, %v2393_v57  ;;  %v2394_v10 = vld [vmem:[#allocation46_spill] sm:$0xff] }
 0x14b   : > { %v668_v44 = vadd.f32 %v604_v3, %v360_v62  ;;  %v667_v63 = vadd.f32 %v603_v52, %v358_v53  ;;  %v481_v3 = vmul.f32 0.5, %v2390_v45  ;;  %v546_v8 = vsub.f32 %v1349_v20, %v482_v60  ;;  %v2392_v53 = vld [vmem:[#allocation44_spill] sm:$0xff] }
 0x14c   : > { %v484_v62 = vmul.f32 0.5, %v2391_v50  ;;  %v2396_v60 = vld [vmem:[#allocation48_spill] sm:$0xff] }
 0x14d   : > { %v734_v14 = vsel %vm1819_vm0, %v540_v4, %v668_v44  ;;  %v733_v15 = vsel %vm1819_vm0, %v539_v5, %v667_v63  ;;  %v610_v5 = vmul.f32 0.5, %v1349_v20  ;;  %v545_v9 = vsub.f32 %v1352_v21, %v481_v3 }
 0x14e   : > { %798 = vst [vmem:[%s1840_s27 + $0x78] sm:$0xff] %v734_v14  ;;  %797 = vst [vmem:[%s1840_s27 + $0x70] sm:$0xff] %v733_v15  ;;  %v364_v11 = vpop.permute.xlu1 %363  ;;  %v362_v46 = vpop.permute.xlu0 %361  ;;  %v483_v44 = vmul.f32 0.5, %v2392_v53  ;;  %v612_v15 = vmul.f32 0.5, %v1359_v22  ;;  %v487_v45 = vmul.f32 0.5, %v2396_v60  ;;  %v621_v60 = vmul.f32 0.5, %v1412_v33 }
 0x14f   : > { %v670_v6 = vadd.f32 %v606_v0, %v364_v11  ;;  %v669_v7 = vadd.f32 %v605_v2, %v362_v46  ;;  %v485_v11 = vmul.f32 0.5, %v2394_v10 }
 0x150   : > { %v547_v61 = vsub.f32 %v1362_v23, %v483_v44 }
 0x151   : > { %v736_v16 = vsel %vm1819_vm0, %v542_v47, %v670_v6  ;;  %v735_v17 = vsel %vm1819_vm0, %v541_v48, %v669_v7  ;;  %v611_v47 = vmul.f32 0.5, %v1362_v23  ;;  %v548_v48 = vsub.f32 %v1359_v22, %v484_v62 }
 0x152   : > { %800 = vst [vmem:[%s1840_s27 + $0x88] sm:$0xff] %v736_v16  ;;  %799 = vst [vmem:[%s1840_s27 + $0x80] sm:$0xff] %v735_v17  ;;  %v368_v52 = vpop.permute.xlu1 %367  ;;  %v366_v12 = vpop.permute.xlu0 %365  ;;  %v613_v16 = vmul.f32 0.5, %v1372_v25  ;;  %v550_v17 = vsub.f32 %v1369_v24, %v486_v58 }
 0x153   : > { %v672_v13 = vadd.f32 %v608_v54, %v368_v52  ;;  %v671_v4 = vadd.f32 %v607_v55, %v366_v12  ;;  %v614_v55 = vmul.f32 0.5, %v1369_v24 }
 0x155   : > { %v738_v18 = vsel %vm1819_vm0, %v544_v1, %v672_v13  ;;  %v737_v19 = vsel %vm1819_vm0, %v543_v51, %v671_v4  ;;  %v549_v1 = vsub.f32 %v1372_v25, %v485_v11  ;;  %v2395_v51 = vld [vmem:[#allocation47_spill] sm:$0xff]  ;;  %v616_v4 = vmul.f32 0.5, %v1379_v26 }
 0x156   : > { %802 = vst [vmem:[%s1840_s27 + $0x98] sm:$0xff] %v738_v18  ;;  %801 = vst [vmem:[%s1840_s27 + $0x90] sm:$0xff] %v737_v19  ;;  %v372_v63 = vpop.permute.xlu1 %371  ;;  %v370_v0 = vpop.permute.xlu0 %369  ;;  %v488_v59 = vmul.f32 0.5, %v2395_v51  ;;  %v551_v18 = vsub.f32 %v1382_v27, %v487_v45  ;;  %v2397_v19 = vld [vmem:[#allocation49_spill] sm:$0xff]  ;;  %v620_v11 = vmul.f32 0.5, %v1399_v30 }
 0x157   : > { %v674_v2 = vadd.f32 %v610_v5, %v372_v63  ;;  %v673_v14 = vadd.f32 %v609_v56, %v370_v0  ;;  %v615_v5 = vmul.f32 0.5, %v1382_v27  ;;  %v618_v0 = vmul.f32 0.5, %v1389_v28 }
 0x158   : > { %v552_v56 = vsub.f32 %v1379_v26, %v488_v59  ;;  %v622_v59 = vmul.f32 0.5, %v1409_v32 }
 0x159   : > { %v740_v20 = vsel %vm1819_vm0, %v546_v8, %v674_v2  ;;  %v739_v21 = vsel %vm1819_vm0, %v545_v9, %v673_v14  ;;  %v490_v8 = vmul.f32 0.5, %v2397_v19  ;;  %v2398_v9 = vld [vmem:[#allocation50_spill] sm:$0xff]  ;;  %v617_v2 = vmul.f32 0.5, %v1392_v29 }
 0x15a   : > { %804 = vst [vmem:[%s1840_s27 + $0xa8] sm:$0xff] %v740_v20  ;;  %803 = vst [vmem:[%s1840_s27 + $0xa0] sm:$0xff] %v739_v21  ;;  %v376_v46 = vpop.permute.xlu1 %375  ;;  %v374_v6 = vpop.permute.xlu0 %373  ;;  %v489_v50 = vmul.f32 0.5, %v2398_v9  ;;  %v2400_v21 = vld [vmem:[#allocation52_spill] sm:$0xff]  ;;  %v623_v19 = vmul.f32 0.5, %v1422_v35 }
 0x15b   : > { %v676_v7 = vadd.f32 %v612_v15, %v376_v46  ;;  %v675_v54 = vadd.f32 %v611_v47, %v374_v6  ;;  %v554_v14 = vsub.f32 %v1389_v28, %v490_v8  ;;  %v2399_v47 = vld [vmem:[#allocation51_spill] sm:$0xff]  ;;  %v619_v46 = vmul.f32 0.5, %v1402_v31 }
 0x15c   : > { %v553_v15 = vsub.f32 %v1392_v29, %v489_v50  ;;  %v492_v20 = vmul.f32 0.5, %v2399_v47  ;;  %v2405_v50 = vld [vmem:[#allocation57_spill] sm:$0xff] }
 0x15d   : > { %v742_v22 = vsel %vm1819_vm0, %v548_v48, %v676_v7  ;;  %v741_v23 = vsel %vm1819_vm0, %v547_v61, %v675_v54  ;;  %v491_v48 = vmul.f32 0.5, %v2400_v21  ;;  %v2401_v54 = vld [vmem:[#allocation53_spill] sm:$0xff] }
 0x15e   : > { %806 = vst [vmem:[%s1840_s27 + $0xb8] sm:$0xff] %v742_v22  ;;  %805 = vst [vmem:[%s1840_s27 + $0xb0] sm:$0xff] %v741_v23  ;;  %v380_v3 = vpop.permute.xlu1 %379  ;;  %v378_v52 = vpop.permute.xlu0 %377  ;;  %v556_v6 = vsub.f32 %v1399_v30, %v492_v20  ;;  %v2407_v20 = vld [vmem:[#allocation59_spill] sm:$0xff] }
 0x15f   : > { %v678_v12 = vadd.f32 %v614_v55, %v380_v3  ;;  %v677_v13 = vadd.f32 %v613_v16, %v378_v52  ;;  %v555_v7 = vsub.f32 %v1402_v31, %v491_v48  ;;  %v494_v55 = vmul.f32 0.5, %v2401_v54  ;;  %v2402_v16 = vld [vmem:[#allocation54_spill] sm:$0xff]  ;;  %v2403_v52 = vld [vmem:[#allocation55_spill] sm:$0xff]  ;;  %v2408_v48 = vld [vmem:[#allocation60_spill] sm:$0xff] }
 0x160   : > { %v493_v22 = vmul.f32 0.5, %v2402_v16  ;;  %v500_v21 = vmul.f32 0.5, %v2407_v20 }
 0x161   : > { %v744_v24 = vsel %vm1819_vm0, %v550_v17, %v678_v12  ;;  %v743_v25 = vsel %vm1819_vm0, %v549_v1, %v677_v13  ;;  %v558_v45 = vsub.f32 %v1409_v32, %v494_v55  ;;  %v496_v12 = vmul.f32 0.5, %v2403_v52  ;;  %v2404_v13 = vld [vmem:[#allocation56_spill] sm:$0xff]  ;;  %v2410_v55 = vld [vmem:[#allocation62_spill] sm:$0xff] }
 0x162   : > { %808 = vst [vmem:[%s1840_s27 + $0xc8] sm:$0xff] %v744_v24  ;;  %807 = vst [vmem:[%s1840_s27 + $0xc0] sm:$0xff] %v743_v25  ;;  %v384_v62 = vpop.permute.xlu1 %383  ;;  %v382_v53 = vpop.permute.xlu0 %381  ;;  %v557_v3 = vsub.f32 %v1412_v33, %v493_v22  ;;  %v501_v16 = vmul.f32 0.5, %v2410_v55 }
 0x163   : > { %v680_v44 = vadd.f32 %v616_v4, %v384_v62  ;;  %v679_v63 = vadd.f32 %v615_v5, %v382_v53  ;;  %v495_v4 = vmul.f32 0.5, %v2404_v13  ;;  %v560_v8 = vsub.f32 %v1419_v34, %v496_v12  ;;  %v2406_v53 = vld [vmem:[#allocation58_spill] sm:$0xff] }
 0x164   : > { %v498_v62 = vmul.f32 0.5, %v2405_v50 }
 0x165   : > { %v746_v26 = vsel %vm1819_vm0, %v552_v56, %v680_v44  ;;  %v745_v27 = vsel %vm1819_vm0, %v551_v18, %v679_v63  ;;  %v624_v18 = vmul.f32 0.5, %v1419_v34  ;;  %v559_v9 = vsub.f32 %v1422_v35, %v495_v4 }
 0x166   : > { %810 = vst [vmem:[%s1840_s27 + $0xd8] sm:$0xff] %v746_v26  ;;  %809 = vst [vmem:[%s1840_s27 + $0xd0] sm:$0xff] %v745_v27  ;;  %v388_v61 = vpop.permute.xlu1 %387  ;;  %v386_v57 = vpop.permute.xlu0 %385  ;;  %v497_v44 = vmul.f32 0.5, %v2406_v53  ;;  %v626_v27 = vmul.f32 0.5, %v1429_v36 }
 0x167   : > { %v682_v58 = vadd.f32 %v618_v0, %v388_v61  ;;  %v681_v10 = vadd.f32 %v617_v2, %v386_v57  ;;  %v499_v61 = vmul.f32 0.5, %v2408_v48 }
 0x168   : > { %v561_v47 = vsub.f32 %v1432_v37, %v497_v44  ;;  %v2415_v44 = vld [vmem:[#allocation8_spill] sm:$0xff] }
 0x169   : > { %v748_v28 = vsel %vm1819_vm0, %v554_v14, %v682_v58  ;;  %v747_v29 = vsel %vm1819_vm0, %v553_v15, %v681_v10  ;;  %v625_v14 = vmul.f32 0.5, %v1432_v37  ;;  %v562_v15 = vsub.f32 %v1429_v36, %v498_v62 }
 0x16a   : > { %812 = vst [vmem:[%s1840_s27 + $0xe8] sm:$0xff] %v748_v28  ;;  %811 = vst [vmem:[%s1840_s27 + $0xe0] sm:$0xff] %v747_v29  ;;  %v392_v23 = vpop.permute.xlu1 %391  ;;  %v390_v17 = vpop.permute.xlu0 %389  ;;  %v627_v28 = vmul.f32 0.5, %v1442_v39  ;;  %v564_v29 = vsub.f32 %v1439_v38, %v500_v21 }
 0x16b   : > { %v684_v1 = vadd.f32 %v620_v11, %v392_v23  ;;  %v683_v51 = vadd.f32 %v619_v46, %v390_v17  ;;  %v628_v46 = vmul.f32 0.5, %v1439_v38 }
 0x16d   : > { %v750_v30 = vsel %vm1819_vm0, %v556_v6, %v684_v1  ;;  %v749_v31 = vsel %vm1819_vm0, %v555_v7, %v683_v51  ;;  %v563_v6 = vsub.f32 %v1442_v39, %v499_v61  ;;  %v2409_v7 = vld [vmem:[#allocation61_spill] sm:$0xff]  ;;  %v630_v51 = vmul.f32 0.5, %v1449_v40  ;;  %v2419_v61 = vld [vmem:[#allocation10_spill] sm:$0xff] }
 0x16e   : > { %814 = vst [vmem:[%s1840_s27 + $0xf8] sm:$0xff] %v750_v30  ;;  %813 = vst [vmem:[%s1840_s27 + $0xf0] sm:$0xff] %v749_v31  ;;  %v396_v5 = vpop.permute.xlu1 %395  ;;  %v394_v24 = vpop.permute.xlu0 %393  ;;  %v502_v54 = vmul.f32 0.5, %v2409_v7  ;;  %v565_v30 = vsub.f32 %v1452_v41, %v501_v16  ;;  %v2411_v31 = vld [vmem:[#allocation63_spill] sm:$0xff] }
 0x16f   : > { %v686_v25 = vadd.f32 %v622_v59, %v396_v5  ;;  %v685_v56 = vadd.f32 %v621_v60, %v394_v24  ;;  %v629_v59 = vmul.f32 0.5, %v1452_v41  ;;  %v632_v24 = vmul.f32 0.5, %v1459_v42 }
 0x170   : > { %v566_v60 = vsub.f32 %v1449_v40, %v502_v54 }
 0x171   : > { %v752_v32 = vsel %vm1819_vm0, %v558_v45, %v686_v25  ;;  %v751_v33 = vsel %vm1819_vm0, %v557_v3, %v685_v56  ;;  %v504_v45 = vmul.f32 0.5, %v2411_v31  ;;  %v2412_v3 = vld [vmem:[#allocation64_spill] sm:$0xff]  ;;  %v631_v25 = vmul.f32 0.5, %v1462_v43 }
 0x172   : > { %816 = vst [vmem:[%s1840_s27 + $0x108] sm:$0xff] %v752_v32  ;;  %815 = vst [vmem:[%s1840_s27 + $0x100] sm:$0xff] %v751_v33  ;;  %v400_v63 = vpop.permute.xlu1 %399  ;;  %v398_v0 = vpop.permute.xlu0 %397  ;;  %v503_v52 = vmul.f32 0.5, %v2412_v3  ;;  %v2414_v33 = vld [vmem:[#allocation66_spill] sm:$0xff] }
 0x173   : > { %v688_v2 = vadd.f32 %v624_v18, %v400_v63  ;;  %v687_v26 = vadd.f32 %v623_v19, %v398_v0  ;;  %v568_v56 = vsub.f32 %v1459_v42, %v504_v45  ;;  %v2413_v19 = vld [vmem:[#allocation65_spill] sm:$0xff]  ;;  %v634_v63 = vmul.f32 0.5, %v2415_v44  ;;  %v2426_v45 = vld [vmem:[#allocation72_spill] sm:$0xff] }
 0x174   : > { %v567_v18 = vsub.f32 %v1462_v43, %v503_v52  ;;  %v506_v32 = vmul.f32 0.5, %v2413_v19  ;;  %v2416_v0 = vld [vmem:[#allocation9_spill] sm:$0xff]  ;;  %v511_v3 = vmul.f32 0.5, %v2426_v45 }
 0x175   : > { %v754_v34 = vsel %vm1819_vm0, %v560_v8, %v688_v2  ;;  %v753_v35 = vsel %vm1819_vm0, %v559_v9, %v687_v26  ;;  %v505_v8 = vmul.f32 0.5, %v2414_v33  ;;  %v633_v2 = vmul.f32 0.5, %v2416_v0 }
 0x176   : > { %818 = vst [vmem:[%s1840_s27 + $0x118] sm:$0xff] %v754_v34  ;;  %817 = vst [vmem:[%s1840_s27 + $0x110] sm:$0xff] %v753_v35  ;;  %v404_v57 = vpop.permute.xlu1 %403  ;;  %v402_v58 = vpop.permute.xlu0 %401  ;;  %v570_v26 = vsub.f32 %v2415_v44, %v506_v32  ;;  %v2418_v35 = vld [vmem:[#allocation68_spill] sm:$0xff]  ;;  %v1003_v32 = vld [vmem:[%s1242_s30 + $0x190] sm:$0xff] }
 0x177   : > { %v690_v10 = vadd.f32 %v626_v27, %v404_v57  ;;  %v689_v11 = vadd.f32 %v625_v14, %v402_v58  ;;  %v569_v27 = vsub.f32 %v2416_v0, %v505_v8  ;;  %v2417_v14 = vld [vmem:[#allocation67_spill] sm:$0xff]  ;;  %v636_v57 = vmul.f32 0.5, %v2419_v61  ;;  %v2429_v8 = vld [vmem:[#allocation73_spill] sm:$0xff] }
 0x178   : > { %v508_v34 = vmul.f32 0.5, %v2417_v14  ;;  %v2420_v58 = vld [vmem:[#allocation11_spill] sm:$0xff]  ;;  %v575_v33 = vsub.f32 %v1003_v32, %v511_v3 }
 0x179   : > { %v756_v36 = vsel %vm1819_vm0, %v562_v15, %v690_v10  ;;  %v755_v37 = vsel %vm1819_vm0, %v561_v47, %v689_v11  ;;  %v507_v15 = vmul.f32 0.5, %v2418_v35  ;;  %v635_v10 = vmul.f32 0.5, %v2420_v58  ;;  %v2435_v3 = vld [vmem:[#allocation79_spill] sm:$0xff] }
 0x17a   : > { %820 = vst [vmem:[%s1840_s27 + $0x128] sm:$0xff] %v756_v36  ;;  %819 = vst [vmem:[%s1840_s27 + $0x120] sm:$0xff] %v755_v37  ;;  %v408_v22 = vpop.permute.xlu1 %407  ;;  %v406_v23 = vpop.permute.xlu0 %405  ;;  %v2421_v37 = vld [vmem:[#allocation69_spill] sm:$0xff] }
 0x17b   : > { %v692_v17 = vadd.f32 %v628_v46, %v408_v22  ;;  %v691_v1 = vadd.f32 %v627_v28, %v406_v23  ;;  %v572_v28 = vsub.f32 %v2419_v61, %v508_v34  ;;  %v571_v36 = vsub.f32 %v2420_v58, %v507_v15  ;;  %v2423_v23 = vld [vmem:[#allocation12_spill] sm:$0xff]  ;;  %v2431_v15 = vld [vmem:[#allocation75_spill] sm:$0xff] }
 0x17d   : > { %v758_v38 = vsel %vm1819_vm0, %v564_v29, %v692_v17  ;;  %v757_v39 = vsel %vm1819_vm0, %v563_v6, %v691_v1  ;;  %v510_v29 = vmul.f32 0.5, %v2421_v37  ;;  %v2422_v6 = vld [vmem:[#allocation70_spill] sm:$0xff]  ;;  %v638_v17 = vmul.f32 0.5, %v2423_v23  ;;  %v2424_v1 = vld [vmem:[#allocation13_spill] sm:$0xff] }
 0x17e   : > { %822 = vst [vmem:[%s1840_s27 + $0x138] sm:$0xff] %v758_v38  ;;  %821 = vst [vmem:[%s1840_s27 + $0x130] sm:$0xff] %v757_v39  ;;  %v412_v12 = vpop.permute.xlu1 %411  ;;  %v410_v13 = vpop.permute.xlu0 %409  ;;  %v509_v7 = vmul.f32 0.5, %v2422_v6 }
 0x17f   : > { %v694_v4 = vadd.f32 %v630_v51, %v412_v12  ;;  %v693_v5 = vadd.f32 %v629_v59, %v410_v13  ;;  %v637_v51 = vmul.f32 0.5, %v2424_v1  ;;  %v574_v39 = vsub.f32 %v2423_v23, %v510_v29 }
 0x181   : > { %v760_v40 = vsel %vm1819_vm0, %v566_v60, %v694_v4  ;;  %v759_v41 = vsel %vm1819_vm0, %v565_v30, %v693_v5  ;;  %v573_v60 = vsub.f32 %v2424_v1, %v509_v7  ;;  %v2425_v30 = vld [vmem:[#allocation71_spill] sm:$0xff]  ;;  %v2427_v5 = vld [vmem:[#allocation14_spill] sm:$0xff]  ;;  %v2433_v7 = vld [vmem:[#allocation77_spill] sm:$0xff] }
 0x182   : > { %824 = vst [vmem:[%s1840_s27 + $0x148] sm:$0xff] %v760_v40  ;;  %823 = vst [vmem:[%s1840_s27 + $0x140] sm:$0xff] %v759_v41  ;;  %v416_v9 = vpop.permute.xlu1 %415  ;;  %v414_v50 = vpop.permute.xlu0 %413  ;;  %v512_v31 = vmul.f32 0.5, %v2425_v30 }
 0x183   : > { %v696_v62 = vadd.f32 %v632_v24, %v416_v9  ;;  %v695_v53 = vadd.f32 %v631_v25, %v414_v50  ;;  %v640_v24 = vmul.f32 0.5, %v2427_v5  ;;  %v2428_v25 = vld [vmem:[#allocation15_spill] sm:$0xff]  ;;  %v514_v9 = vmul.f32 0.5, %v2429_v8  ;;  %v2430_v50 = vld [vmem:[#allocation74_spill] sm:$0xff] }
 0x184   : > { %v639_v40 = vmul.f32 0.5, %v2428_v25 }
 0x185   : > { %v762_v42 = vsel %vm1819_vm0, %v568_v56, %v696_v62  ;;  %v761_v43 = vsel %vm1819_vm0, %v567_v18, %v695_v53  ;;  %v1002_v18 = vld [vmem:[%s1242_s30 + $0x198] sm:$0xff]  ;;  %v513_v62 = vmul.f32 0.5, %v2430_v50 }
 0x186   : > { %826 = vst [vmem:[%s1840_s27 + $0x158] sm:$0xff] %v762_v42  ;;  %825 = vst [vmem:[%s1840_s27 + $0x150] sm:$0xff] %v761_v43  ;;  %v420_v47 = vpop.permute.xlu1 %419  ;;  %v418_v20 = vpop.permute.xlu0 %417  ;;  %v576_v19 = vsub.f32 %v1002_v18, %v512_v31  ;;  %v1005_v43 = vld [vmem:[%s1242_s30 + $0x1a0] sm:$0xff] }
 0x187   : > { %v698_v21 = vadd.f32 %v634_v63, %v420_v47  ;;  %v697_v48 = vadd.f32 %v633_v2, %v418_v20  ;;  %v1004_v2 = vld [vmem:[%s1242_s30 + $0x1a8] sm:$0xff]  ;;  %v577_v35 = vsub.f32 %v1005_v43, %v513_v62  ;;  %v516_v47 = vmul.f32 0.5, %v2431_v15  ;;  %v2432_v20 = vld [vmem:[#allocation76_spill] sm:$0xff]  ;;  %v2438_v62 = vld [vmem:[#allocation82_spill] sm:$0xff] }
 0x188   : > { %v642_v42 = vmul.f32 0.5, %v1004_v2  ;;  %v578_v34 = vsub.f32 %v1004_v2, %v514_v9  ;;  %v2437_v9 = vld [vmem:[#allocation81_spill] sm:$0xff] }
 0x189   : > { %v764_v11 = vsel %vm1819_vm0, %v570_v26, %v698_v21  ;;  %v763_v46 = vsel %vm1819_vm0, %v569_v27, %v697_v48  ;;  %v641_v26 = vmul.f32 0.5, %v1005_v43  ;;  %v515_v21 = vmul.f32 0.5, %v2432_v20 }
 0x18a   : > { %828 = vst [vmem:[%s1840_s27 + $0x168] sm:$0xff] %v764_v11  ;;  %827 = vst [vmem:[%s1840_s27 + $0x160] sm:$0xff] %v763_v46  ;;  %v424_v54 = vpop.permute.xlu1 %423  ;;  %v422_v55 = vpop.permute.xlu0 %421  ;;  %v1007_v46 = vld [vmem:[%s1242_s30 + $0x1b0] sm:$0xff]  ;;  %v522_v50 = vmul.f32 0.5, %v2437_v9 }
 0x18b   : > { %v700_v16 = vadd.f32 %v636_v57, %v424_v54  ;;  %v699_v22 = vadd.f32 %v635_v10, %v422_v55  ;;  %v1006_v10 = vld [vmem:[%s1242_s30 + $0x1b8] sm:$0xff]  ;;  %v579_v6 = vsub.f32 %v1007_v46, %v515_v21  ;;  %v518_v54 = vmul.f32 0.5, %v2433_v7  ;;  %v2434_v55 = vld [vmem:[#allocation78_spill] sm:$0xff] }
 0x18c   : > { %v644_v11 = vmul.f32 0.5, %v1006_v10  ;;  %v580_v29 = vsub.f32 %v1006_v10, %v516_v47  ;;  %v1014_v21 = vld [vmem:[%s1242_s30 + $0x1f8] sm:$0xff] }
 0x18d   : > { %v766_v59 = vsel %vm1819_vm0, %v572_v28, %v700_v16  ;;  %v765_v38 = vsel %vm1819_vm0, %v571_v36, %v699_v22  ;;  %v643_v28 = vmul.f32 0.5, %v1007_v46  ;;  %v517_v16 = vmul.f32 0.5, %v2434_v55 }
 0x18e   : > { %830 = vst [vmem:[%s1840_s27 + $0x178] sm:$0xff] %v766_v59  ;;  %829 = vst [vmem:[%s1840_s27 + $0x170] sm:$0xff] %v765_v38  ;;  %v428_v52 = vpop.permute.xlu1 %427  ;;  %v426_v12 = vpop.permute.xlu0 %425  ;;  %v1009_v38 = vld [vmem:[%s1242_s30 + $0x1c0] sm:$0xff] }
 0x18f   : > { %v702_v13 = vadd.f32 %v638_v17, %v428_v52  ;;  %v701_v4 = vadd.f32 %v637_v51, %v426_v12  ;;  %v1008_v51 = vld [vmem:[%s1242_s30 + $0x1c8] sm:$0xff]  ;;  %v581_v45 = vsub.f32 %v1009_v38, %v517_v16  ;;  %v520_v52 = vmul.f32 0.5, %v2435_v3  ;;  %v2436_v12 = vld [vmem:[#allocation80_spill] sm:$0xff] }
 0x190   : > { %v646_v59 = vmul.f32 0.5, %v1008_v51  ;;  %v582_v31 = vsub.f32 %v1008_v51, %v518_v54 }
 0x191   : > { %v768_v41 = vsel %vm1819_vm0, %v574_v39, %v702_v13  ;;  %v767_v56 = vsel %vm1819_vm0, %v573_v60, %v701_v4  ;;  %v645_v39 = vmul.f32 0.5, %v1009_v38  ;;  %v519_v13 = vmul.f32 0.5, %v2436_v12 }
 0x192   : > { %832 = vst [vmem:[%s1840_s27 + $0x188] sm:$0xff] %v768_v41  ;;  %831 = vst [vmem:[%s1840_s27 + $0x180] sm:$0xff] %v767_v56  ;;  %v432_v53 = vpop.permute.xlu1 %431  ;;  %v430_v44 = vpop.permute.xlu0 %429  ;;  %v1011_v56 = vld [vmem:[%s1242_s30 + $0x1d0] sm:$0xff] }
 0x193   : > { %v704_v63 = vadd.f32 %v640_v24, %v432_v53  ;;  %v703_v0 = vadd.f32 %v639_v40, %v430_v44  ;;  %v1010_v40 = vld [vmem:[%s1242_s30 + $0x1d8] sm:$0xff]  ;;  %v647_v18 = vmul.f32 0.5, %v1011_v56  ;;  %v583_v8 = vsub.f32 %v1011_v56, %v519_v13 }
 0x194   : > { %v648_v41 = vmul.f32 0.5, %v1010_v40  ;;  %v521_v53 = vmul.f32 0.5, %v2438_v62 }
 0x195   : > { %v770_v27 = vsel %vm1819_vm0, %v576_v19, %v704_v63  ;;  %v769_v14 = vsel %vm1819_vm0, %v575_v33, %v703_v0  ;;  %v584_v33 = vsub.f32 %v1010_v40, %v520_v52 }
 0x196   : > { %834 = vst [vmem:[%s1840_s27 + $0x198] sm:$0xff] %v770_v27  ;;  %833 = vst [vmem:[%s1840_s27 + $0x190] sm:$0xff] %v769_v14  ;;  %v436_v48 = vpop.permute.xlu1 %435  ;;  %v434_v61 = vpop.permute.xlu0 %433 }
 0x197   : > { %v706_v57 = vadd.f32 %v642_v42, %v436_v48  ;;  %v705_v58 = vadd.f32 %v641_v26, %v434_v61  ;;  %v1012_v42 = vld [vmem:[%s1242_s30 + $0x1e8] sm:$0xff]  ;;  %v1013_v26 = vld [vmem:[%s1242_s30 + $0x1e0] sm:$0xff]  ;;  %v652_v48 = vmul.f32 0.5, %v1014_v21  ;;  %v1015_v61 = vld [vmem:[%s1242_s30 + $0x1f0] sm:$0xff] }
 0x198   : > { %v650_v43 = vmul.f32 0.5, %v1012_v42  ;;  %v649_v27 = vmul.f32 0.5, %v1013_v26  ;;  %v585_v15 = vsub.f32 %v1013_v26, %v521_v53 }
 0x199   : > { %v772_v36 = vsel %vm1819_vm0, %v578_v34, %v706_v57  ;;  %v771_v37 = vsel %vm1819_vm0, %v577_v35, %v705_v58  ;;  %v586_v35 = vsub.f32 %v1012_v42, %v522_v50  ;;  %v651_v57 = vmul.f32 0.5, %v1015_v61  ;;  %v2439_v58 = vld [vmem:[#allocation21_spill] sm:$0xff] }
 0x19a   : > { %836 = vst [vmem:[%s1840_s27 + $0x1a8] sm:$0xff] %v772_v36  ;;  %835 = vst [vmem:[%s1840_s27 + $0x1a0] sm:$0xff] %v771_v37  ;;  %v440_v22 = vpop.permute.xlu1 %439  ;;  %v438_v23 = vpop.permute.xlu0 %437  ;;  %v524_v10 = vmul.f32 0.5, %v2439_v58 }
 0x19b   : > { %v708_v17 = vadd.f32 %v644_v11, %v440_v22  ;;  %v707_v1 = vadd.f32 %v643_v28, %v438_v23  ;;  %v2440_v11 = vld [vmem:[#allocation83_spill] sm:$0xff] }
 0x19c   : > { %v523_v46 = vmul.f32 0.5, %v2440_v11  ;;  %v588_v54 = vsub.f32 %v1014_v21, %v524_v10 }
 0x19d   : > { %v774_v60 = vsel %vm1819_vm0, %v580_v29, %v708_v17  ;;  %v773_v30 = vsel %vm1819_vm0, %v579_v6, %v707_v1 }
 0x19e   : > { %838 = vst [vmem:[%s1840_s27 + $0x1b8] sm:$0xff] %v774_v60  ;;  %837 = vst [vmem:[%s1840_s27 + $0x1b0] sm:$0xff] %v773_v30  ;;  %v444_v4 = vpop.permute.xlu1 %443  ;;  %v442_v5 = vpop.permute.xlu0 %441  ;;  %v587_v55 = vsub.f32 %v1015_v61, %v523_v46 }
 0x19f   : > { %v710_v24 = vadd.f32 %v646_v59, %v444_v4  ;;  %v709_v25 = vadd.f32 %v645_v39, %v442_v5 }
 0x1a1   : > { %v776_v19 = vsel %vm1819_vm0, %v582_v31, %v710_v24  ;;  %v775_v32 = vsel %vm1819_vm0, %v581_v45, %v709_v25 }
 0x1a2   : > { %840 = vst [vmem:[%s1840_s27 + $0x1c8] sm:$0xff] %v776_v19  ;;  %839 = vst [vmem:[%s1840_s27 + $0x1c0] sm:$0xff] %v775_v32  ;;  %v448_v44 = vpop.permute.xlu1 %447  ;;  %v446_v63 = vpop.permute.xlu0 %445 }
 0x1a3   : > { %v712_v0 = vadd.f32 %v648_v41, %v448_v44  ;;  %v711_v2 = vadd.f32 %v647_v18, %v446_v63 }
 0x1a5   : > { %v778_v14 = vsel %vm1819_vm0, %v584_v33, %v712_v0  ;;  %v777_v34 = vsel %vm1819_vm0, %v583_v8, %v711_v2 }
 0x1a6   : > { %842 = vst [vmem:[%s1840_s27 + $0x1d8] sm:$0xff] %v778_v14  ;;  %841 = vst [vmem:[%s1840_s27 + $0x1d0] sm:$0xff] %v777_v34  ;;  %v452_v47 = vpop.permute.xlu1 %451  ;;  %v450_v20 = vpop.permute.xlu0 %449 }
 0x1a7   : > { %v714_v28 = vadd.f32 %v650_v43, %v452_v47  ;;  %v713_v36 = vadd.f32 %v649_v27, %v450_v20 }
 0x1a9   : > { %v780_v37 = vsel %vm1819_vm0, %v586_v35, %v714_v28  ;;  %v779_v29 = vsel %vm1819_vm0, %v585_v15, %v713_v36 }
 0x1aa   : > { %844 = vst [vmem:[%s1840_s27 + $0x1e8] sm:$0xff] %v780_v37  ;;  %843 = vst [vmem:[%s1840_s27 + $0x1e0] sm:$0xff] %v779_v29  ;;  %v456_v6 = vpop.permute.xlu1 %455  ;;  %v454_v7 = vpop.permute.xlu0 %453 }
 0x1ab   : > { %v716_v16 = vadd.f32 %v652_v48, %v456_v6  ;;  %v715_v22 = vadd.f32 %v651_v57, %v454_v7 }
 0x1ad   : > { %v782_v23 = vsel %vm1819_vm0, %v588_v54, %v716_v16  ;;  %v781_v17 = vsel %vm1819_vm0, %v587_v55, %v715_v22 }
 0x1ae   : > { %846 = vst [vmem:[%s1840_s27 + $0x1f8] sm:$0xff] %v782_v23  ;;  %845 = vst [vmem:[%s1840_s27 + $0x1f0] sm:$0xff] %v781_v17 }
 0x1af   : > { %1059 = shalt.err (!%p1056_p2)
}
 0x1b0   : > { %s1060_s16 = scalar_lea.hbm %s2203_s3, 8192  ;;  %s1064_s22 = scalar_lea.hbm %s2256_s1, 16384 }
 0x1b1   : > { %p1061_p4 = scmp.ne.s32.totalorder %s2203_s3, %s1060_s16  ;;  %p1065_p9 = scmp.lt.u32.totalorder %s2203_s3, %s2256_s1 }
 0x1b2   : > { %p1066_p1 = scmp.lt.u32.totalorder %s1064_s22, %s1060_s16  ;;  %p1068_p6 = scmp.lt.u32.totalorder %s1060_s16, %s2203_s3 }
 0x1b3   : > { %p1062_p5 = pnand %p1061_p4, %p2441_p11 }
 0x1b4   : > { %p1067_p3 = por %p1066_p1, %p1065_p9 }
 0x1b5   : > { %p1063_p7 = pneg %p1062_p5 }
 0x1b6   : > { %p1069_p12 = por %p1068_p6, %p1067_p3 }
 0x1b8   : > { %p1070_p13 = pnand %p1069_p12, %p1063_p7 }
 0x1ba   : > { %1073 = shalt.err (!%p1070_p13)
}
 0x1bb   : > { %s1120_s30 = smov 128   ;;  %s1121_s25 = smov 8  }
 0x1bc   : > { %952 = dma.vmem_to_hbm [thread:$0]  (%p2441_p11), %s2205_s29, 8192, %s2203_s3, %s848_s4, %s1120_s30, %s1120_s30, %s1121_s25  }
 0x1bd PF: > { %s876_s17 = sand.u32 1, %s1100_s6   ;;  %p2442_p8 = scmp.ne.s32.totalorder %s2283_s19, 0 }
 0x1be   : > { %p2443_p10 = scmp.ge.s32.totalorder %s1112_s9, 2  ;;  %s877_s27 = scalar_lea.sflag [#allocation4], %s876_s17 }
 0x1c0   : > { %p959_p0 = pnand %p2443_p10, %p2442_p8 }
 0x1c2   : > { %1095 = dma.done.wait (!%p959_p0), %s877_s27, 8192  }
 0x1c3   : > { %1097 = vsyncadd (!%p959_p0), %s877_s27, 4294959104  ;;  %p14_p2 = scmp.ge.s32.totalorder %s1157_s12, 4   ;;  %s2444_s6 = smov %s1104_s7 }
 0x1c4   : > { %s2445_s7 = smov %s1108_s8  ;;  %s2446_s8 = smov %s1169_s15 }
 0x1c5   : > { %s2447_s9 = smov %s1157_s12  ;;  %16 = sbr.rel (!%p14_p2) target bundleno = 5 (0x5), region = 69 }
 0x1cc   :  { %882 = vsyncpa [#allocation3], 1 }
 0x1cd   :  { %884 = vsyncpa [#allocation3 + $0x1], 1 }
 0x1ce   :  { %885 = vsyncpa [#allocation4], 1 }
 0x1cf   :  { %887 = vsyncpa [#allocation4 + $0x1], 1 }

</bundles_post_ra>
